<compile_context>
chip_gen: v5e
topology: v5e:2x2
jax: 0.10.0
libtpu: 0.0.40
codegen_flags: <defaults>
</compile_context>

<pallas_src>
import functools

import jax
import jax.numpy as jnp
from jax import lax
from jax.experimental import pallas as pl
from jax.experimental.pallas import tpu as pltpu


def _node_drop_kernel(h_ref, w1t_ref, b1_ref, w2_ref, b2_ref, u_ref,
                      logits_ref, mask_ref, partial_ref,
                      *, temperature, n_valid, tile_n, chunk_h):
    # h_ref: [TN, D] f32 native layout -> single HBM pass; cast to bf16 in VMEM.
    h_bf = h_ref[...].astype(jnp.bfloat16)
    H2 = w1t_ref.shape[0]

    # MLP chunked over H2 so only a [chunk_h, TN] f32 intermediate is live at a time
    # (cuts vld/vst pressure and VMEM footprint; matters most on v7x's 64 MiB).
    logits = jnp.zeros((1, tile_n), jnp.float32)
    for c in range(H2 // chunk_h):
        rows = pl.ds(c * chunk_h, chunk_h)                 # static slice -> free
        # z^T = W1^T[rows] @ h^T: contract rhs on its last dim (Mosaic transposes in
        # VMEM on the otherwise-idle XLU); result is lane-dense over nodes. bf16 MXU,
        # f32 accumulation.
        z = lax.dot_general(w1t_ref[rows, :], h_bf,
                            dimension_numbers=(((1,), (1,)), ((), ())),
                            preferred_element_type=jnp.float32) + b1_ref[rows, :]
        a = jnp.maximum(z, 0.0)                            # ReLU (VPU, f32)
        # Second Linear ([H2] -> 1) as VPU multiply + sublane (XLU) reduce; kept off
        # the MXU so matmul-bound v5e does not get a second matmul on its critical path.
        logits = logits + jnp.sum(a * w2_ref[rows, :], axis=0, keepdims=True)
    logits = logits + b2_ref[0]
    logits_ref[...] = logits                               # [1, TN] lane-dense vst

    # ---- Bernoulli(logits * temperature): sample = 1 iff u < sigmoid(s) ----
    s = logits * temperature
    p = jax.nn.sigmoid(s)
    mask = (u_ref[...] < p).astype(jnp.float32)
    mask_ref[...] = mask

    # ---- BCEWithLogits(s, mask, 'sum'): per-tile partial sum, padded lanes masked ----
    lane = lax.broadcasted_iota(jnp.int32, (1, tile_n), 1)
    valid = (pl.program_id(0) * tile_n + lane) < n_valid
    bce = jnp.maximum(s, 0.0) - s * mask + jnp.log1p(jnp.exp(-jnp.abs(s)))
    bce = jnp.where(valid, bce, 0.0)
    partial_ref[...] = jnp.broadcast_to(jnp.sum(bce, axis=-1, keepdims=True),
                                        partial_ref.shape)


def _round_up(x, m):
    return ((x + m - 1) // m) * m


def node_drop_forward(h, params, key, *, temperature=1.0, tile_n=2048):
    """Returns (drop_logits [N], drop_mask [N], bce_sum scalar)."""
    N, D = h.shape
    w1, b1, w2, b2 = params
    H2 = w1.shape[1]

    # ---- Tile selection (generation-aware) ----
    # Cap at 4096 so f32 intermediates + double-buffered blocks stay inside v7x's
    # 64 MiB VMEM; 2048-4096 already amortizes the ~0.35 us per-grid-step overhead
    # on v6e/v7x.  Prefer >= 2 tiles so the "parallel" axis can use both v7x TCs.
    tile_n = min(int(tile_n), _round_up(N, 128))
    tile_n = max(128, (min(tile_n, 4096) // 128) * 128)
    if tile_n >= N and N > 256:
        tile_n = _round_up(pl.cdiv(N, 2), 128)
    N_pad = _round_up(N, tile_n)
    G = N_pad // tile_n
    chunk_h = 128 if (H2 % 128 == 0 and H2 > 128) else H2

    # ---- Inputs in their native layouts (no extra HBM pass over h) ----
    h_in = h.astype(jnp.float32)
    if N_pad != N:
        h_in = jnp.pad(h_in, ((0, N_pad - N), (0, 0)))     # zero tail tile (masked in-kernel)
    w1t = w1.T.astype(jnp.bfloat16)                        # [H2, D] (tiny one-time op)
    b1c = b1.reshape(H2, 1).astype(jnp.float32)            # [H2, 1]
    w2c = w2.reshape(H2, 1).astype(jnp.float32)            # [H2, 1]
    b2s = jnp.asarray(b2, jnp.float32).reshape(1)          # (1,) scalar -> SMEM
    # Bernoulli uniforms: lane-dense row, decorrelated streams via jax.random.
    u = jax.random.uniform(key, (1, N_pad), jnp.float32)

    # ---- VMEM budget with padded-block accounting ----
    vmem_bytes = int(
        2 * tile_n * D * 4                 # h tile, f32, double-buffered
        + 2 * H2 * D * 2                   # W1^T, bf16, double-buffered
        + 2 * 2 * H2 * 128 * 4             # b1 / w2 (H2,1) blocks pad lanes to 128
        + 2 * 8 * tile_n * 4               # uniforms (1,tile_n) pads sublanes to 8
        + 2 * 2 * 8 * tile_n * 4           # logits + mask output blocks (sublane pad to 8)
        + 2 * 8 * 128 * 4                  # partials block
        + 3 * chunk_h * tile_n * 4         # f32 chunk intermediates (z / a / product)
        + 4 * 8 * tile_n * 4               # logits / s / p / mask rows
        + (2 << 20))                       # headroom
    vmem_bytes = min(max(vmem_bytes, 16 << 20), 100 << 20)

    kernel = functools.partial(_node_drop_kernel, temperature=float(temperature),
                               n_valid=int(N), tile_n=int(tile_n), chunk_h=int(chunk_h))

    # TODO(synk): on v7x, mark the constant-index weight inputs pipeline_mode=pl.Buffered(1)
    # to keep a single VMEM copy (skipped here for portability across jax versions).
    logits_row, mask_row, partials = pl.pallas_call(
        kernel,
        out_shape=(jax.ShapeDtypeStruct((1, N_pad), jnp.float32),        # drop_logits
                   jax.ShapeDtypeStruct((1, N_pad), jnp.float32),        # drop_mask
                   jax.ShapeDtypeStruct((1, 128 * G), jnp.float32)),     # per-tile BCE partials
        grid_spec=pltpu.PrefetchScalarGridSpec(
            num_scalar_prefetch=0,
            grid=(G,),
            in_specs=[
                pl.BlockSpec((tile_n, D), lambda i: (i, 0)),             # h tile (native layout)
                pl.BlockSpec((H2, D),     lambda i: (0, 0)),             # W1^T (full, bf16)
                pl.BlockSpec((H2, 1),     lambda i: (0, 0)),             # b1 column
                pl.BlockSpec((H2, 1),     lambda i: (0, 0)),             # w2 column
                pl.BlockSpec(memory_space=pltpu.MemorySpace.SMEM),       # b2 scalar
                pl.BlockSpec((1, tile_n), lambda i: (0, i)),             # uniforms row
            ],
            out_specs=[
                pl.BlockSpec((1, tile_n), lambda i: (0, i)),
                pl.BlockSpec((1, tile_n), lambda i: (0, i)),
                pl.BlockSpec((1, 128),    lambda i: (0, i)),
            ]),
        compiler_params=pltpu.CompilerParams(
            # No resident accumulator -> node-tile axis is safely parallel
            # (megacore sharding on v7x; neutral on single-TC v5e/v6e).
            dimension_semantics=("parallel",),
            vmem_limit_bytes=vmem_bytes),
    )(h_in, w1t, b1c, w2c, b2s, u)

    drop_logits = logits_row[0, :N]
    drop_mask = mask_row[0, :N]
    bce_sum = jnp.sum(partials.reshape(G, 128)[:, 0])
    return drop_logits, drop_mask, bce_sum


if __name__ == "__main__":
    key = jax.random.PRNGKey(0)
    N, D = 500, 128           # N nodes (non-multiple of 128 -> exercises tail tile), hid_dim=128
    temperature = 1.0
    k_h, k_w1, k_b1, k_w2, k_b2, k_u = jax.random.split(key, 6)

    h = jax.random.normal(k_h, (N, D), dtype=jnp.float32)

    # PyTorch nn.Linear-style uniform(-1/sqrt(fan_in), 1/sqrt(fan_in)) init.
    bound1 = 1.0 / (D ** 0.5)
    w1 = jax.random.uniform(k_w1, (D, 2 * D), jnp.float32, -bound1, bound1)
    b1 = jax.random.uniform(k_b1, (1, 2 * D), jnp.float32, -bound1, bound1)
    bound2 = 1.0 / ((2 * D) ** 0.5)
    w2 = jax.random.uniform(k_w2, (2 * D, 1), jnp.float32, -bound2, bound2)
    b2 = jax.random.uniform(k_b2, (1, 1), jnp.float32, -bound2, bound2)

    logits, mask_raw, bce_sum = node_drop_forward(
        h, (w1, b1, w2, b2), k_u, temperature=temperature, tile_n=256)

    # PyTorch resamples up to 10x if (almost) all nodes would be dropped, else zeros the
    # mask.  Single-check fallback here.
    # TODO(synk): the host-level up-to-10x resample loop, the optional `magnitude`
    # keep-mask, and the subgraph / x[mask] dynamic-shape graph surgery have no
    # fixed-shape Pallas equivalent.
    drop_mask = jnp.where(jnp.sum(mask_raw) >= N - 1,
                          jnp.zeros_like(mask_raw), mask_raw)
    log_likelihood = -bce_sum

    # ---- Pure-JAX reference checks ----
    # Logits: reference with the same bf16-rounded operands / f32 accumulation as the kernel.
    hb = h.astype(jnp.bfloat16).astype(jnp.float32)
    w1b = w1.astype(jnp.bfloat16).astype(jnp.float32)
    ref_logits = (jnp.maximum(hb @ w1b + b1, 0.0) @ w2 + b2).reshape(-1)
    assert jnp.allclose(logits, ref_logits, atol=2e-3, rtol=2e-3)

    # Mask is binary.
    assert bool(jnp.all((mask_raw == 0.0) | (mask_raw == 1.0)))

    # BCE sum: recompute from the kernel's own logits / mask over the valid N nodes.
    s = logits * temperature
    ref_bce = jnp.sum(jnp.maximum(s, 0.0) - s * mask_raw + jnp.log1p(jnp.exp(-jnp.abs(s))))
    assert jnp.allclose(bce_sum, ref_bce, rtol=1e-4, atol=1e-4)

    jax.block_until_ready((logits, drop_mask, log_likelihood))
    print("KERNEL_OK")
</pallas_src>

<mosaic_0001>
module attributes {stable_mosaic.version = 11 : i64} {
  func.func @_node_drop_kernel(%arg0: i32, %arg1: memref<256x128xf32, #tpu.memory_space<vmem>>, %arg2: memref<256x128xbf16, #tpu.memory_space<vmem>>, %arg3: memref<256x1xf32, #tpu.memory_space<vmem>>, %arg4: memref<256x1xf32, #tpu.memory_space<vmem>>, %arg5: memref<1xf32, #tpu.memory_space<smem>>, %arg6: memref<1x256xf32, #tpu.memory_space<vmem>>, %arg7: memref<1x256xf32, #tpu.memory_space<vmem>>, %arg8: memref<1x256xf32, #tpu.memory_space<vmem>>, %arg9: memref<1x128xf32, #tpu.memory_space<vmem>>) attributes {dimension_semantics = [#tpu.dimension_semantics<parallel>], iteration_bounds = array<i64: 2>, scalar_prefetch = 0 : i64, scratch_operands = 0 : i64, tpu.core_type = #tpu.core_type<tc>, window_params = [{transform_indices = @transform_0, window_bounds = array<i64: 256, 128>}, {pipeline_mode = #tpu.pipeline_mode<synchronous>, transform_indices = @transform_1, window_bounds = array<i64: 256, 128>}, {pipeline_mode = #tpu.pipeline_mode<synchronous>, transform_indices = @transform_2, window_bounds = array<i64: 256, 1>}, {pipeline_mode = #tpu.pipeline_mode<synchronous>, transform_indices = @transform_3, window_bounds = array<i64: 256, 1>}, {transform_indices = @transform_4, window_bounds = array<i64: 1>}, {transform_indices = @transform_5, window_bounds = array<i64: 1, 256>}, {transform_indices = @transform_6, window_bounds = array<i64: 1, 256>}, {transform_indices = @transform_7, window_bounds = array<i64: 1, 256>}, {transform_indices = @transform_8, window_bounds = array<i64: 1, 128>}]} {
    %c0 = arith.constant 0 : index
    %c0_0 = arith.constant 0 : index
    %0 = vector.load %arg1[%c0, %c0_0] : memref<256x128xf32, #tpu.memory_space<vmem>>, vector<256x128xf32>
    %1 = arith.truncf %0 : vector<256x128xf32> to vector<256x128xbf16>
    %cst = arith.constant 0.000000e+00 : f32
    %2 = vector.broadcast %cst : f32 to vector<1x256xf32>
    %c0_1 = arith.constant 0 : index
    %c0_2 = arith.constant 0 : index
    %3 = vector.load %arg2[%c0_1, %c0_2] : memref<256x128xbf16, #tpu.memory_space<vmem>>, vector<128x128xbf16>
    %cst_3 = arith.constant dense<0.000000e+00> : vector<128x256xf32>
    %4 = tpu.matmul %3, %1, %cst_3 {dimension_numbers = #tpu.dot_dimension_numbers<[1], [1], [0], [0], [0, 0, 1, 0], [], []>} : vector<128x128xbf16>, vector<256x128xbf16>, vector<128x256xf32> -> vector<128x256xf32>
    %c0_4 = arith.constant 0 : index
    %c0_5 = arith.constant 0 : index
    %5 = vector.load %arg3[%c0_4, %c0_5] : memref<256x1xf32, #tpu.memory_space<vmem>>, vector<128x1xf32>
    %6 = vector.broadcast %5 : vector<128x1xf32> to vector<128x256xf32>
    %7 = arith.addf %4, %6 : vector<128x256xf32>
    %cst_6 = arith.constant 0.000000e+00 : f32
    %8 = vector.broadcast %cst_6 : f32 to vector<128x256xf32>
    %9 = arith.maximumf %7, %8 : vector<128x256xf32>
    %c0_7 = arith.constant 0 : index
    %c0_8 = arith.constant 0 : index
    %10 = vector.load %arg4[%c0_7, %c0_8] : memref<256x1xf32, #tpu.memory_space<vmem>>, vector<128x1xf32>
    %11 = vector.broadcast %10 : vector<128x1xf32> to vector<128x256xf32>
    %12 = arith.mulf %9, %11 : vector<128x256xf32>
    %cst_9 = arith.constant dense<0.000000e+00> : vector<256xf32>
    %13 = vector.multi_reduction <add>, %12, %cst_9 [0] : vector<128x256xf32> to vector<256xf32>
    %14 = vector.shape_cast %13 : vector<256xf32> to vector<1x256xf32>
    %15 = arith.addf %2, %14 : vector<1x256xf32>
    %c128 = arith.constant 128 : index
    %c0_10 = arith.constant 0 : index
    %16 = vector.load %arg2[%c128, %c0_10] : memref<256x128xbf16, #tpu.memory_space<vmem>>, vector<128x128xbf16>
    %cst_11 = arith.constant dense<0.000000e+00> : vector<128x256xf32>
    %17 = tpu.matmul %16, %1, %cst_11 {dimension_numbers = #tpu.dot_dimension_numbers<[1], [1], [0], [0], [0, 0, 1, 0], [], []>} : vector<128x128xbf16>, vector<256x128xbf16>, vector<128x256xf32> -> vector<128x256xf32>
    %c128_12 = arith.constant 128 : index
    %c0_13 = arith.constant 0 : index
    %18 = vector.load %arg3[%c128_12, %c0_13] : memref<256x1xf32, #tpu.memory_space<vmem>>, vector<128x1xf32>
    %19 = vector.broadcast %18 : vector<128x1xf32> to vector<128x256xf32>
    %20 = arith.addf %17, %19 : vector<128x256xf32>
    %cst_14 = arith.constant 0.000000e+00 : f32
    %21 = vector.broadcast %cst_14 : f32 to vector<128x256xf32>
    %22 = arith.maximumf %20, %21 : vector<128x256xf32>
    %c128_15 = arith.constant 128 : index
    %c0_16 = arith.constant 0 : index
    %23 = vector.load %arg4[%c128_15, %c0_16] : memref<256x1xf32, #tpu.memory_space<vmem>>, vector<128x1xf32>
    %24 = vector.broadcast %23 : vector<128x1xf32> to vector<128x256xf32>
    %25 = arith.mulf %22, %24 : vector<128x256xf32>
    %cst_17 = arith.constant dense<0.000000e+00> : vector<256xf32>
    %26 = vector.multi_reduction <add>, %25, %cst_17 [0] : vector<128x256xf32> to vector<256xf32>
    %27 = vector.shape_cast %26 : vector<256xf32> to vector<1x256xf32>
    %28 = arith.addf %15, %27 : vector<1x256xf32>
    %c0_18 = arith.constant 0 : index
    %29 = memref.load %arg5[%c0_18] : memref<1xf32, #tpu.memory_space<smem>>
    %30 = vector.broadcast %29 : f32 to vector<1x256xf32>
    %31 = arith.addf %28, %30 : vector<1x256xf32>
    %c0_19 = arith.constant 0 : index
    %c0_20 = arith.constant 0 : index
    %32 = vector.load %arg7[%c0_19, %c0_20] : memref<1x256xf32, #tpu.memory_space<vmem>>, vector<1x256xf32>
    tpu.vector_store %arg7[%c0_19, %c0_20], %31 {strides = array<i32>} : memref<1x256xf32, #tpu.memory_space<vmem>>, vector<1x256xf32>,
    %cst_21 = arith.constant 1.000000e+00 : f32
    %33 = vector.broadcast %cst_21 : f32 to vector<1x256xf32>
    %34 = arith.mulf %31, %33 : vector<1x256xf32>
    %35 = arith.negf %34 : vector<1x256xf32>
    %36 = math.exp %35 : vector<1x256xf32>
    %cst_22 = arith.constant 1.000000e+00 : f32
    %37 = vector.broadcast %cst_22 : f32 to vector<1x256xf32>
    %38 = arith.addf %37, %36 : vector<1x256xf32>
    %39 = arith.divf %37, %38 : vector<1x256xf32>
    %c0_23 = arith.constant 0 : index
    %c0_24 = arith.constant 0 : index
    %40 = vector.load %arg6[%c0_23, %c0_24] : memref<1x256xf32, #tpu.memory_space<vmem>>, vector<1x256xf32>
    %41 = arith.cmpf olt, %40, %39 : vector<1x256xf32>
    %42 = arith.extui %41 : vector<1x256xi1> to vector<1x256xi32>
    %43 = arith.sitofp %42 : vector<1x256xi32> to vector<1x256xf32>
    %c0_25 = arith.constant 0 : index
    %c0_26 = arith.constant 0 : index
    %44 = vector.load %arg8[%c0_25, %c0_26] : memref<1x256xf32, #tpu.memory_space<vmem>>, vector<1x256xf32>
    tpu.vector_store %arg8[%c0_25, %c0_26], %43 {strides = array<i32>} : memref<1x256xf32, #tpu.memory_space<vmem>>, vector<1x256xf32>,
    %45 = tpu.iota {dimensions = array<i32: 1>} : vector<1x256xi32>
    %c256_i32 = arith.constant 256 : i32
    %46 = arith.muli %arg0, %c256_i32 : i32
    %47 = vector.broadcast %46 : i32 to vector<1x256xi32>
    %48 = arith.addi %47, %45 : vector<1x256xi32>
    %c500_i32 = arith.constant 500 : i32
    %49 = vector.broadcast %c500_i32 : i32 to vector<1x256xi32>
    %50 = arith.cmpi slt, %48, %49 : vector<1x256xi32>
    %cst_27 = arith.constant 0.000000e+00 : f32
    %51 = vector.broadcast %cst_27 : f32 to vector<1x256xf32>
    %52 = arith.maximumf %34, %51 : vector<1x256xf32>
    %53 = arith.mulf %34, %43 : vector<1x256xf32>
    %54 = arith.subf %52, %53 : vector<1x256xf32>
    %55 = math.absf %34 : vector<1x256xf32>
    %cst_28 = arith.constant 0.000000e+00 : f32
    %56 = vector.broadcast %cst_28 : f32 to vector<1x256xf32>
    %57 = arith.subf %56, %55 : vector<1x256xf32>
    %58 = math.exp %57 : vector<1x256xf32>
    %59 = math.log1p %58 : vector<1x256xf32>
    %60 = arith.addf %54, %59 : vector<1x256xf32>
    %cst_29 = arith.constant 0.000000e+00 : f32
    %61 = vector.broadcast %cst_29 : f32 to vector<1x256xf32>
    %62 = arith.select %50, %60, %61 : vector<1x256xi1>, vector<1x256xf32>
    %cst_30 = arith.constant dense<0.000000e+00> : vector<1xf32>
    %63 = vector.multi_reduction <add>, %62, %cst_30 [1] : vector<1x256xf32> to vector<1xf32>
    %64 = vector.shape_cast %63 : vector<1xf32> to vector<1x1xf32>
    %65 = vector.shape_cast %64 : vector<1x1xf32> to vector<1x1xf32>
    %66 = vector.broadcast %65 : vector<1x1xf32> to vector<1x128xf32>
    %c0_31 = arith.constant 0 : index
    %c0_32 = arith.constant 0 : index
    %67 = vector.load %arg9[%c0_31, %c0_32] : memref<1x128xf32, #tpu.memory_space<vmem>>, vector<1x128xf32>
    tpu.vector_store %arg9[%c0_31, %c0_32], %66 {strides = array<i32>} : memref<1x128xf32, #tpu.memory_space<vmem>>, vector<1x128xf32>,
    return
  }
  func.func @transform_0(%arg0: i32) -> (i32, i32) {
    %c0_i32 = arith.constant 0 : i32
    %c0_i32_0 = arith.constant 0 : i32
    return %arg0, %c0_i32 : i32, i32
  }
  func.func @transform_1(%arg0: i32) -> (i32, i32) {
    %c0_i32 = arith.constant 0 : i32
    %c0_i32_0 = arith.constant 0 : i32
    %c0_i32_1 = arith.constant 0 : i32
    return %c0_i32, %c0_i32_0 : i32, i32
  }
  func.func @transform_2(%arg0: i32) -> (i32, i32) {
    %c0_i32 = arith.constant 0 : i32
    %c0_i32_0 = arith.constant 0 : i32
    %c0_i32_1 = arith.constant 0 : i32
    return %c0_i32, %c0_i32_0 : i32, i32
  }
  func.func @transform_3(%arg0: i32) -> (i32, i32) {
    %c0_i32 = arith.constant 0 : i32
    %c0_i32_0 = arith.constant 0 : i32
    %c0_i32_1 = arith.constant 0 : i32
    return %c0_i32, %c0_i32_0 : i32, i32
  }
  func.func @transform_4(%arg0: i32) -> i32 {
    %c0_i32 = arith.constant 0 : i32
    %c0_i32_0 = arith.constant 0 : i32
    return %c0_i32 : i32
  }
  func.func @transform_5(%arg0: i32) -> (i32, i32) {
    %c0_i32 = arith.constant 0 : i32
    %c0_i32_0 = arith.constant 0 : i32
    return %c0_i32, %arg0 : i32, i32
  }
  func.func @transform_6(%arg0: i32) -> (i32, i32) {
    %c0_i32 = arith.constant 0 : i32
    %c0_i32_0 = arith.constant 0 : i32
    return %c0_i32, %arg0 : i32, i32
  }
  func.func @transform_7(%arg0: i32) -> (i32, i32) {
    %c0_i32 = arith.constant 0 : i32
    %c0_i32_0 = arith.constant 0 : i32
    return %c0_i32, %arg0 : i32, i32
  }
  func.func @transform_8(%arg0: i32) -> (i32, i32) {
    %c0_i32 = arith.constant 0 : i32
    %c0_i32_0 = arith.constant 0 : i32
    return %c0_i32, %arg0 : i32, i32
  }
}

</mosaic_0001>

<bundles_post_ra>
// kernel: tpu_custom_call.1
= control target key start
LH: loop header
LB: loop body
LE: loop exit
PB: predicated region body
PF: predicated region fallthrough
CT: control target
= control target key end

     0   :  { %s2763_s0 = inlined_call_operand.vmem [shape: f32[512,128], index: 0, kind: input, shape index: {}]   ;;  %s2764_s1 = inlined_call_operand.hbm [shape: bf16[256,128], index: 1, kind: input, shape index: {}]   ;;  %s2765_s2 = inlined_call_operand.vmem [shape: f32[256,1], index: 2, kind: input, shape index: {}]   ;;  %s2766_s3 = inlined_call_operand.vmem [shape: f32[256,1], index: 3, kind: input, shape index: {}]   ;;  %s2767_s4 = inlined_call_operand.<no memory space> [shape: f32[1], index: 4, kind: input, shape index: {}]   ;;  %s2768_s5 = inlined_call_operand.hbm [shape: f32[1,512], index: 5, kind: input, shape index: {}]   ;;  %s2769_s6 = inlined_call_operand.hbm [shape: f32[1,512], index: 6, kind: output, shape index: {0}]   ;;  %s2770_s7 = inlined_call_operand.hbm [shape: f32[1,512], index: 7, kind: output, shape index: {1}]   ;;  %s2771_s8 = inlined_call_operand.hbm [shape: f32[1,256], index: 8, kind: output, shape index: {2}]  }
   0x1   :  { %2779 = sst [smem:[#allocation21_spill]] %s2763_s0 }
   0x2   :  { %2780 = sst [smem:[#allocation22_spill]] %s2764_s1 }
   0x3   :  { %14 = sst [smem:[#allocation2]] %s2767_s4 }
   0x4   :  { %15 = vsyncpa [#allocation4], 0 }
   0x5   :  { %16 = vsyncpa [#allocation7], 0 }
   0x6   :  { %18 = vsyncpa [#allocation7 + $0x1], 0 }
   0x7   :  { %19 = vsyncpa [#allocation5], 0 }
   0x8   :  { %21 = vsyncpa [#allocation5 + $0x1], 0 }
   0x9   :  { %22 = vsyncpa [#allocation10], 0 }
   0xa   :  { %24 = vsyncpa [#allocation10 + $0x1], 0  ;;  %s2116_s29 = smov 0   ;;  %s2118_s30 = smov 0  }
   0xb   :  { %s2120_s9 = smov 0   ;;  %s2122_s10 = smov 0  }
   0xc LB: > { %s2781_s1 = sld [smem:[#allocation22_spill]]  ;;  %s2140_s13 = sadd.s32 4294967295, %s2061_s10   ;;  %s2061_s10 = sphi %s2122_s10, %s2808_s10   ;;  %s2057_s9 = sphi %s2120_s9, %s2807_s9   ;;  %s2053_s30 = sphi %s2118_s30, %s2806_s30   ;;  %s2049_s29 = sphi %s2116_s29, %s2805_s29  }
   0xd   : > { %p1679_p0 = scmp.ge.s32.totalorder %s2061_s10, 1  ;;  %p161_p1 = scmp.eq.s32.totalorder %s2140_s13, 0 }
   0xe   : > { %p249_p2 = scmp.lt.s32.totalorder %s2061_s10, 3  ;;  %s2063_s15 = smov [#allocation3]  }
   0xf   : > { %s262_s16 = sshll.u32 %s2063_s15, 4  ;;  %s2064_s17 = smov 64   ;;  %s263_s16 = int_to_ptr.vmem [resolvable:$true] %s262_s16 }
  0x10   : > { %p2145_p3 = pnand %p1679_p0, %p249_p2  ;;  %s2065_s18 = smov 4  }
  0x11   : > { %s2772_s19 = sadd.s32 4294967294, %s2061_s10   ;;  %s2156_s20 = sadd.s32 1, %s2061_s10  }
  0x12   : > { %s260_s12 = sshll.u32 %s2781_s1, 4  ;;  %p1793_p4 = pneg %p2145_p3  ;;  %s261_s12 = int_to_ptr.hbm [resolvable:$true] %s260_s12 }
  0x13   : > { %s147_s21 = sadd.s32 1, %s2057_s9  ;;  %s144_s22 = ssub.s32 %s2061_s10, %s2156_s20 }
  0x14   : > { %p1794_p6 = pnand %p1793_p4, %p161_p1  ;;  %p154_p7 = scmp.ne.s32.totalorder %s2057_s9, %s2053_s30 }
  0x15   : > { %p145_p8 = scmp.eq.s32.totalorder %s144_s22, 0  ;;  %p155_p9 = scmp.eq.s32.totalorder %s2061_s10, 0 }
  0x16   : > { %1796 = dma.hbm_to_vmem [thread:$0]  (!%p1794_p6), %s261_s12, 2048, %s263_s16, [#allocation4], %s2064_s17, %s2064_s17, %s2065_s18  }
  0x17   : > { %p160_p10 = scmp.ne.s32.totalorder %s2053_s30, %s2049_s29  ;;  %p184_p11 = scmp.eq.s32.totalorder %s2140_s13, 1 }
  0x18   : > { %s2168_s23 = scalar_select %p145_p8, %s2057_s9, %s147_s21  }
  0x19   : > { %p2172_p12 = por %p161_p1, %p160_p10  ;;  %p2176_p13 = por %p184_p11, %p154_p7 }
  0x1a   : > { %p190_p0 = scmp.eq.s32.totalorder %s2772_s19, 1  ;;  %p156_p2 = por %p155_p9, %p154_p7 }
  0x1b   : > { %s294_s26 = sand.u32 1, %s2057_s9   ;;  %p1812_p6 = scmp.lt.s32.totalorder %s2061_s10, 2 }
  0x1c   : > { %p2183_p4 = por %p190_p0, %p160_p10  ;;  %s1682_s28 = sshll.u32 %s294_s26, 1 }
  0x1d   : > { %s1683_s4 = sshll.u32 %s2061_s10, 1  ;;  %s298_s17 = scalar_lea.vmem [#allocation6], %s1682_s28 }
  0x1e   : > { %s302_s15 = scalar_lea.hbm %s2768_s5, %s1683_s4  ;;  %s306_s18 = sshll.u32 %s298_s17, 4  ;;  %s307_s18 = int_to_ptr.vmem [resolvable:$true] %s306_s18 }
  0x1f   : > { %s304_s16 = sshll.u32 %s302_s15, 4  ;;  %p2192_p8 = pnand %p1812_p6, %p156_p2  ;;  %s305_s16 = int_to_ptr.hbm [resolvable:$true] %s304_s16 }
  0x20   : > { %s295_s22 = scalar_lea.sflag [#allocation7], %s294_s26  ;;  %s1901_s19 = sshra.s32 %s305_s16, 4  ;;  %s1902_s19 = int_to_ptr.hbm [resolvable:$true] %s1901_s19 }
  0x21   : > { %s1903_s1 = scalar_lea.hbm %s1902_s19, 2  ;;  %p1905_p9 = pneg %p2192_p8 }
  0x22   : > { %p1904_p7 = scmp.ne.s32.totalorder %s1902_s19, %s1903_s1  ;;  %s1908_s28 = scalar_lea.hbm %s2768_s5, 4 }
  0x23   : > { %p1909_p0 = scmp.lt.s32.totalorder %s1902_s19, %s2768_s5  ;;  %p1910_p2 = scmp.lt.s32.totalorder %s1908_s28, %s1903_s1 }
  0x24   : > { %p1906_p10 = pnand %p1905_p9, %p1904_p7 }
  0x25   : > { %p1911_p6 = por %p1910_p2, %p1909_p0 }
  0x26   : > { %p1907_p11 = pneg %p1906_p10 }
  0x28   : > { %p1912_p5 = pnand %p1911_p6, %p1907_p11 }
  0x2a   : > { %1915 = shalt.err (!%p1912_p5)
}
  0x2b   : > { %1800 = dma.hbm_to_vmem [thread:$0]  (!%p2192_p8), %s305_s16, 32, %s307_s18, %s295_s22  }
  0x2c   : > { %315 = sbr.rel (%p2145_p3) target bundleno = 578 (0x242), region = 44 }
  0x31   : > { %2032 = dma.done.wait (%p161_p1), [#allocation4], 2048  }
  0x32   : > { %2034 = vsyncadd (%p161_p1), [#allocation4], 4294965248  ;;  %s2213_s26 = sand.u32 1, %s2053_s30  }
  0x33   : > { %s2216_s1 = sshll.u32 %s2213_s26, 1  ;;  %s323_s19 = scalar_lea.sflag [#allocation7], %s2213_s26 }
  0x34   : > { %s326_s16 = scalar_lea.vmem [#allocation6], %s2216_s1 }
  0x35   : > { %2036 = dma.done.wait (%p2172_p12), %s323_s19, 32  }
  0x36   : > { %2038 = vsyncadd (%p2172_p12), %s323_s19, 4294967264  ;;  %s1689_s14 = sshll.u32 %s2140_s13, 5  ;;  %v2066_v0 = vmov 0   ;;  %s2787_s0 = sld [smem:[#allocation21_spill]]  ;;  %v451_v1 = vld [vmem:[%s2765_s2 + $0x20] sm:$0xff]  ;;  %v449_v2 = vld [vmem:[%s2765_s2 + $0x10] sm:$0xff] }
  0x37   : > { %1854 = vset.pattern.permute.xlu2 %v2066_v0  ;;  %1853 = vset.pattern.permute.xlu1 %v2066_v0  ;;  %p375_p1 = scmp.lt.s32.totalorder %s1689_s14, 63  ;;  %v447_v3 = vld [vmem:[%s2765_s2] sm:$0xff]  ;;  %v452_v10 = vld [vmem:[%s2765_s2 + $0x28] sm:$0xff]  ;;  %v450_v13 = vld [vmem:[%s2765_s2 + $0x18] sm:$0xff]  ;;  %s1355_s4 = sld [smem:[#allocation2]]  ;;  %vm1362_vm0 = vcmask 1040384  }
  0x38   : > { %1852 = vset.pattern.permute.xlu0 %v2066_v0  ;;  %485 = vperm.xlu2 %1854, %v451_v1   ;;  %v448_v16 = vld [vmem:[%s2765_s2 + $0x8] sm:$0xff]  ;;  %v455_v19 = vld [vmem:[%s2765_s2 + $0x40] sm:$0xff]  ;;  %v454_v22 = vld [vmem:[%s2765_s2 + $0x38] sm:$0xff]  ;;  %s2778_s11 = scalar_lea.vmem [#allocation8], %s2216_s1  ;;  %s1758_s24 = sshll.u32 %s2140_s13, 8 }
  0x39   : > { %s2810_s14 = smov (!%p375_p1, %s1689_s14), 63  ;;  %475 = vperm.xlu1 %1853, %v449_v2   ;;  %465 = vperm.xlu0 %1852, %v447_v3   ;;  %v453_v25 = vld [vmem:[%s2765_s2 + $0x30] sm:$0xff]  ;;  %v458_v28 = vld [vmem:[%s2765_s2 + $0x58] sm:$0xff]  ;;  %v456_v34 = vld [vmem:[%s2765_s2 + $0x48] sm:$0xff]  ;;  %s1761_s28 = sshll.u32 %s2140_s13, 1 }
  0x3a   : > { %s1690_s17 = sshll.u32 %s2810_s14, 3  ;;  %v457_v31 = vld [vmem:[%s2765_s2 + $0x50] sm:$0xff]  ;;  %v460_v40 = vld [vmem:[%s2765_s2 + $0x68] sm:$0xff]  ;;  %v459_v43 = vld [vmem:[%s2765_s2 + $0x60] sm:$0xff]  ;;  %s1508_s15 = scalar_lea.hbm %s2770_s7, %s1761_s28 }
  0x3b   : > { %v461_v37 = vld [vmem:[%s2765_s2 + $0x70] sm:$0xff]  ;;  %v722_v46 = vld [vmem:[%s2766_s3 + $0x8] sm:$0xff]  ;;  %v721_v49 = vld [vmem:[%s2766_s3] sm:$0xff]  ;;  %s1479_s19 = sand.u32 1, %s2140_s13   ;;  %s367_s14 = scalar_lea.vmem [#allocation9], %s2216_s1 }
  0x3c   : > { %s2228_s22 = scalar_lea.vmem %s2787_s0, %s1690_s17  ;;  %v462_v52 = vld [vmem:[%s2765_s2 + $0x78] sm:$0xff]  ;;  %v725_v55 = vld [vmem:[%s2766_s3 + $0x20] sm:$0xff]  ;;  %v723_v61 = vld [vmem:[%s2766_s3 + $0x10] sm:$0xff]  ;;  %s1512_s17 = sshll.u32 %s1508_s15, 4  ;;  %s1513_s17 = int_to_ptr.hbm [resolvable:$true] %s1512_s17 }
  0x3d   : > { %v397_v4 = vld [vmem:[%s2228_s22 + $0x70] sm:$0xff]  ;;  %v398_v5 = vld [vmem:[%s2228_s22 + $0x78] sm:$0xff]  ;;  %v395_v11 = vld [vmem:[%s2228_s22 + $0x60] sm:$0xff]  ;;  %s1945_s12 = sshra.s32 %s1513_s17, 4  ;;  %s1946_s12 = int_to_ptr.hbm [resolvable:$true] %s1945_s12 }
  0x3e   : > { %v413_v6 = vld [vmem:[%s2228_s22 + $0xf0] sm:$0xff]  ;;  %v422_v7 = vpack.c.bf16 %v398_v5, %v397_v4  ;;  %v414_v8 = vld [vmem:[%s2228_s22 + $0xf8] sm:$0xff]  ;;  %v396_v12 = vld [vmem:[%s2228_s22 + $0x68] sm:$0xff]  ;;  %p1952_p8 = scmp.lt.s32.totalorder %s1946_s12, %s2770_s7 }
  0x3f   : > { %v430_v9 = vpack.c.bf16 %v414_v8, %v413_v6  ;;  %v411_v14 = vld [vmem:[%s2228_s22 + $0xe0] sm:$0xff]  ;;  %v412_v15 = vld [vmem:[%s2228_s22 + $0xe8] sm:$0xff]  ;;  %v421_v17 = vpack.c.bf16 %v396_v12, %v395_v11  ;;  %v393_v20 = vld [vmem:[%s2228_s22 + $0x50] sm:$0xff] }
  0x40   : > { %591 = vmatpush.bf16.xpose.msra.mxu0 %v422_v7  ;;  %1053 = vmatpush.bf16.xpose.msra.mxu2 %v422_v7  ;;  %v429_v18 = vpack.c.bf16 %v412_v15, %v411_v14  ;;  %v394_v21 = vld [vmem:[%s2228_s22 + $0x58] sm:$0xff]  ;;  %v409_v23 = vld [vmem:[%s2228_s22 + $0xd0] sm:$0xff]  ;;  %v391_v29 = vld [vmem:[%s2228_s22 + $0x40] sm:$0xff] }
  0x41   : > { %640 = vmatpush.bf16.xpose.msra.mxu1 %v430_v9  ;;  %1102 = vmatpush.bf16.xpose.msra.mxu3 %v430_v9  ;;  %v410_v24 = vld [vmem:[%s2228_s22 + $0xd8] sm:$0xff]  ;;  %v420_v26 = vpack.c.bf16 %v394_v21, %v393_v20  ;;  %v392_v30 = vld [vmem:[%s2228_s22 + $0x48] sm:$0xff]  ;;  %v407_v32 = vld [vmem:[%s2228_s22 + $0xc0] sm:$0xff] }
  0x42   : > { %490 = vperm.xlu2 %1854, %v452_v10   ;;  %480 = vperm.xlu1 %1853, %v450_v13   ;;  %v428_v27 = vpack.c.bf16 %v410_v24, %v409_v23  ;;  %v408_v33 = vld [vmem:[%s2228_s22 + $0xc8] sm:$0xff]  ;;  %v419_v35 = vpack.c.bf16 %v392_v30, %v391_v29  ;;  %v389_v38 = vld [vmem:[%s2228_s22 + $0x30] sm:$0xff]  ;;  %v390_v39 = vld [vmem:[%s2228_s22 + $0x38] sm:$0xff] }
  0x43   : > { %470 = vperm.xlu0 %1852, %v448_v16   ;;  %v427_v36 = vpack.c.bf16 %v408_v33, %v407_v32  ;;  %v405_v41 = vld [vmem:[%s2228_s22 + $0xb0] sm:$0xff]  ;;  %v406_v42 = vld [vmem:[%s2228_s22 + $0xb8] sm:$0xff]  ;;  %v418_v44 = vpack.c.bf16 %v390_v39, %v389_v38  ;;  %v387_v47 = vld [vmem:[%s2228_s22 + $0x20] sm:$0xff] }
  0x44   : > { %v426_v45 = vpack.c.bf16 %v406_v42, %v405_v41  ;;  %v388_v48 = vld [vmem:[%s2228_s22 + $0x28] sm:$0xff]  ;;  %v403_v50 = vld [vmem:[%s2228_s22 + $0xa0] sm:$0xff]  ;;  %v385_v56 = vld [vmem:[%s2228_s22 + $0x10] sm:$0xff] }
  0x45   : > { %v404_v51 = vld [vmem:[%s2228_s22 + $0xa8] sm:$0xff]  ;;  %v417_v53 = vpack.c.bf16 %v388_v48, %v387_v47  ;;  %v386_v57 = vld [vmem:[%s2228_s22 + $0x18] sm:$0xff]  ;;  %v401_v59 = vld [vmem:[%s2228_s22 + $0x90] sm:$0xff] }
  0x46   : > { %v425_v54 = vpack.c.bf16 %v404_v51, %v403_v50  ;;  %v724_v58 = vld [vmem:[%s2766_s3 + $0x18] sm:$0xff]  ;;  %v416_v62 = vpack.c.bf16 %v386_v57, %v385_v56  ;;  %v383_v1 = vld [vmem:[%s2228_s22] sm:$0xff]  ;;  %v384_v2 = vld [vmem:[%s2228_s22 + $0x8] sm:$0xff] }
  0x47   : > { %v402_v60 = vld [vmem:[%s2228_s22 + $0x98] sm:$0xff]  ;;  %v727_v3 = vld [vmem:[%s2766_s3 + $0x30] sm:$0xff]  ;;  %v399_v4 = vld [vmem:[%s2228_s22 + $0x80] sm:$0xff]  ;;  %v415_v7 = vpack.c.bf16 %v384_v2, %v383_v1 }
  0x48   : > { %592 = vmatpush.bf16.xpose.msra.mxu0 %v421_v17  ;;  %1054 = vmatpush.bf16.xpose.msra.mxu2 %v421_v17  ;;  %v424_v63 = vpack.c.bf16 %v402_v60, %v401_v59  ;;  %v728_v0 = vld [vmem:[%s2766_s3 + $0x38] sm:$0xff]  ;;  %v400_v5 = vld [vmem:[%s2228_s22 + $0x88] sm:$0xff]  ;;  %v731_v9 = vld [vmem:[%s2766_s3 + $0x50] sm:$0xff]  ;;  %s2683_s22 = sshll.u32 %s367_s14, 4  ;;  %s1511_s22 = int_to_ptr.vmem [resolvable:$true] %s2683_s22 }
  0x49   : > { %641 = vmatpush.bf16.xpose.msra.mxu1 %v429_v18  ;;  %1103 = vmatpush.bf16.xpose.msra.mxu3 %v429_v18  ;;  %v726_v6 = vld [vmem:[%s2766_s3 + $0x28] sm:$0xff]  ;;  %v423_v8 = vpack.c.bf16 %v400_v5, %v399_v4  ;;  %v729_v11 = vld [vmem:[%s2766_s3 + $0x40] sm:$0xff]  ;;  %v732_v16 = vld [vmem:[%s2766_s3 + $0x58] sm:$0xff] }
  0x4a   : > { %505 = vperm.xlu2 %1854, %v455_v19   ;;  %500 = vperm.xlu1 %1853, %v454_v22   ;;  %v730_v10 = vld [vmem:[%s2766_s3 + $0x48] sm:$0xff]  ;;  %v1765_v12 = vld [vmem:[#allocation3] sm:$0xff]  ;;  %v736_v18 = vld [vmem:[%s2766_s3 + $0x78] sm:$0xff] }
  0x4b   : > { %495 = vperm.xlu0 %1852, %v453_v25   ;;  %v1773_v13 = vld [vmem:[#allocation3 + $0x40] sm:$0xff]  ;;  %v734_v14 = vld [vmem:[%s2766_s3 + $0x68] sm:$0xff]  ;;  %v735_v19 = vld [vmem:[%s2766_s3 + $0x70] sm:$0xff] }
  0x4c   : > { %v733_v15 = vld [vmem:[%s2766_s3 + $0x60] sm:$0xff]  ;;  %v1766_v20 = vld [vmem:[#allocation3 + $0x8] sm:$0xff]  ;;  %v912_v22 = vld [vmem:[%s2765_s2 + $0x98] sm:$0xff] }
  0x4d   : > { %v909_v17 = vld [vmem:[%s2765_s2 + $0x80] sm:$0xff]  ;;  %v1774_v21 = vld [vmem:[#allocation3 + $0x48] sm:$0xff]  ;;  %v911_v23 = vld [vmem:[%s2765_s2 + $0x90] sm:$0xff] }
  0x4e   : > { %v910_v24 = vld [vmem:[%s2765_s2 + $0x88] sm:$0xff]  ;;  %v1183_v25 = vld [vmem:[%s2766_s3 + $0x80] sm:$0xff]  ;;  %v1775_v29 = vld [vmem:[#allocation3 + $0x50] sm:$0xff] }
  0x4f   : > { %v1185_v32 = vld [vmem:[%s2766_s3 + $0x90] sm:$0xff]  ;;  %v1184_v33 = vld [vmem:[%s2766_s3 + $0x88] sm:$0xff]  ;;  %v1768_v38 = vld [vmem:[#allocation3 + $0x18] sm:$0xff] }
  0x50   : > { %593 = vmatpush.bf16.xpose.msra.mxu0 %v420_v26  ;;  %1055 = vmatpush.bf16.xpose.msra.mxu2 %v420_v26  ;;  %v914_v26 = vld [vmem:[%s2765_s2 + $0xa8] sm:$0xff]  ;;  %v1776_v39 = vld [vmem:[#allocation3 + $0x58] sm:$0xff] }
  0x51   : > { %642 = vmatpush.bf16.xpose.msra.mxu1 %v428_v27  ;;  %1104 = vmatpush.bf16.xpose.msra.mxu3 %v428_v27  ;;  %v913_v27 = vld [vmem:[%s2765_s2 + $0xa0] sm:$0xff]  ;;  %v1190_v50 = vld [vmem:[%s2766_s3 + $0xb8] sm:$0xff]  ;;  %v918_v51 = vld [vmem:[%s2765_s2 + $0xc8] sm:$0xff] }
  0x52   : > { %520 = vperm.xlu2 %1854, %v458_v28   ;;  %515 = vperm.xlu1 %1853, %v457_v31   ;;  %v1767_v28 = vld [vmem:[#allocation3 + $0x10] sm:$0xff]  ;;  %v1186_v31 = vld [vmem:[%s2766_s3 + $0x98] sm:$0xff]  ;;  %v1192_v56 = vld [vmem:[%s2766_s3 + $0xc8] sm:$0xff] }
  0x53   : > { %510 = vperm.xlu0 %1852, %v456_v34   ;;  %v920_v57 = vld [vmem:[%s2765_s2 + $0xd8] sm:$0xff]  ;;  %v1770_v1 = vld [vmem:[#allocation3 + $0x28] sm:$0xff] }
  0x54   : > { %v1778_v2 = vld [vmem:[#allocation3 + $0x68] sm:$0xff] }
  0x58   : > { %594 = vmatpush.bf16.xpose.msra.mxu0 %v419_v35  ;;  %1056 = vmatpush.bf16.xpose.msra.mxu2 %v419_v35  ;;  %v916_v35 = vld [vmem:[%s2765_s2 + $0xb8] sm:$0xff] }
  0x59   : > { %643 = vmatpush.bf16.xpose.msra.mxu1 %v427_v36  ;;  %1105 = vmatpush.bf16.xpose.msra.mxu3 %v427_v36  ;;  %v1187_v36 = vld [vmem:[%s2766_s3 + $0xa0] sm:$0xff] }
  0x5a   : > { %535 = vperm.xlu2 %1854, %v461_v37   ;;  %530 = vperm.xlu1 %1853, %v460_v40   ;;  %v915_v37 = vld [vmem:[%s2765_s2 + $0xb0] sm:$0xff] }
  0x5b   : > { %525 = vperm.xlu0 %1852, %v459_v43   ;;  %v1189_v43 = vld [vmem:[%s2766_s3 + $0xb0] sm:$0xff] }
  0x60   : > { %595 = vmatpush.bf16.xpose.msra.mxu0 %v418_v44  ;;  %1057 = vmatpush.bf16.xpose.msra.mxu2 %v418_v44  ;;  %v917_v44 = vld [vmem:[%s2765_s2 + $0xc0] sm:$0xff] }
  0x61   : > { %644 = vmatpush.bf16.xpose.msra.mxu1 %v426_v45  ;;  %1106 = vmatpush.bf16.xpose.msra.mxu3 %v426_v45  ;;  %v1188_v45 = vld [vmem:[%s2766_s3 + $0xa8] sm:$0xff] }
  0x62   : > { %744 = vperm.xlu2 %1854, %v722_v46   ;;  %739 = vperm.xlu1 %1853, %v721_v49   ;;  %v919_v49 = vld [vmem:[%s2765_s2 + $0xd0] sm:$0xff] }
  0x63   : > { %540 = vperm.xlu0 %1852, %v462_v52   ;;  %v1769_v52 = vld [vmem:[#allocation3 + $0x20] sm:$0xff] }
  0x68   : > { %596 = vmatpush.bf16.xpose.msra.mxu0 %v417_v53  ;;  %1058 = vmatpush.bf16.xpose.msra.mxu2 %v417_v53  ;;  %v1777_v53 = vld [vmem:[#allocation3 + $0x60] sm:$0xff] }
  0x69   : > { %645 = vmatpush.bf16.xpose.msra.mxu1 %v425_v54  ;;  %1107 = vmatpush.bf16.xpose.msra.mxu3 %v425_v54 }
  0x6a   : > { %759 = vperm.xlu2 %1854, %v725_v55   ;;  %754 = vperm.xlu1 %1853, %v724_v58   ;;  %v1191_v58 = vld [vmem:[%s2766_s3 + $0xc0] sm:$0xff] }
  0x6b   : > { %749 = vperm.xlu0 %1852, %v723_v61  }
  0x70   : > { %597 = vmatpush.bf16.xpose.msra.mxu0 %v416_v62  ;;  %1059 = vmatpush.bf16.xpose.msra.mxu2 %v416_v62  ;;  %v922_v62 = vld [vmem:[%s2765_s2 + $0xe8] sm:$0xff] }
  0x71   : > { %646 = vmatpush.bf16.xpose.msra.mxu1 %v424_v63  ;;  %1108 = vmatpush.bf16.xpose.msra.mxu3 %v424_v63  ;;  %v1193_v63 = vld [vmem:[%s2766_s3 + $0xd0] sm:$0xff] }
  0x72   : > { %774 = vperm.xlu2 %1854, %v728_v0   ;;  %769 = vperm.xlu1 %1853, %v727_v3   ;;  %v921_v0 = vld [vmem:[%s2765_s2 + $0xe0] sm:$0xff] }
  0x73   : > { %764 = vperm.xlu0 %1852, %v726_v6   ;;  %v1195_v6 = vld [vmem:[%s2766_s3 + $0xe0] sm:$0xff] }
  0x78   : > { %598 = vmatpush.bf16.xpose.msra.mxu0 %v415_v7  ;;  %1060 = vmatpush.bf16.xpose.msra.mxu2 %v415_v7  ;;  %v923_v7 = vld [vmem:[%s2765_s2 + $0xf0] sm:$0xff] }
  0x79   : > { %647 = vmatpush.bf16.xpose.msra.mxu1 %v423_v8  ;;  %1109 = vmatpush.bf16.xpose.msra.mxu3 %v423_v8  ;;  %v1194_v8 = vld [vmem:[%s2766_s3 + $0xd8] sm:$0xff] }
  0x7a   : > { %789 = vperm.xlu2 %1854, %v731_v9   ;;  %784 = vperm.xlu1 %1853, %v730_v10  }
  0x7b   : > { %779 = vperm.xlu0 %1852, %v729_v11  }
  0x7f   : > { %599 = vmatmul.bf16.vlgmr.msra.gmra.mxu0 %v1765_v12  ;;  %1061 = vmatmul.bf16.vlgmr.msra.gmra.mxu2 %v1773_v13 }
  0x80   : > { %648 = vmatmul.bf16.vlgmr.msra.gmra.mxu1 %v1765_v12  ;;  %1110 = vmatmul.bf16.vlgmr.msra.gmra.mxu3 %v1773_v13  ;;  %v1197_v12 = vld [vmem:[%s2766_s3 + $0xf0] sm:$0xff]  ;;  %v1196_v13 = vld [vmem:[%s2766_s3 + $0xe8] sm:$0xff] }
  0x82   : > { %804 = vperm.xlu2 %1854, %v734_v14   ;;  %799 = vperm.xlu1 %1853, %v733_v15   ;;  %v924_v14 = vld [vmem:[%s2765_s2 + $0xf8] sm:$0xff]  ;;  %v1771_v15 = vld [vmem:[#allocation3 + $0x30] sm:$0xff] }
  0x83   : > { %794 = vperm.xlu0 %1852, %v732_v16   ;;  %v1779_v16 = vld [vmem:[#allocation3 + $0x70] sm:$0xff] }
  0x8a   : > { %927 = vperm.xlu2 %1854, %v909_v17   ;;  %814 = vperm.xlu1 %1853, %v736_v18  }
  0x8b   : > { %809 = vperm.xlu0 %1852, %v735_v19  }
  0x8f   : > { %604 = vmatmul.bf16.gmra.mxu0 %v1766_v20  ;;  %1066 = vmatmul.bf16.gmra.mxu2 %v1774_v21 }
  0x90   : > { %653 = vmatmul.bf16.gmra.mxu1 %v1766_v20  ;;  %1115 = vmatmul.bf16.gmra.mxu3 %v1774_v21  ;;  %v1198_v20 = vld [vmem:[%s2766_s3 + $0xf8] sm:$0xff] }
  0x92   : > { %942 = vperm.xlu2 %1854, %v912_v22   ;;  %937 = vperm.xlu1 %1853, %v911_v23   ;;  %v2379_v30 = vpop.permute.xlu2 %485  ;;  %v1772_v23 = vld [vmem:[#allocation3 + $0x38] sm:$0xff] }
  0x93   : > { %932 = vperm.xlu0 %1852, %v910_v24   ;;  %v1780_v24 = vld [vmem:[#allocation3 + $0x78] sm:$0xff] }
  0x9a   : > { %1201 = vperm.xlu2 %1854, %v1183_v25   ;;  %952 = vperm.xlu1 %1853, %v914_v26  }
  0x9b   : > { %947 = vperm.xlu0 %1852, %v913_v27  }
  0x9c   : > { %v2390_v34 = vpop.permute.xlu2 %490 }
  0x9f   : > { %609 = vmatmul.bf16.gmra.mxu0 %v1767_v28  ;;  %1071 = vmatmul.bf16.gmra.mxu2 %v1775_v29 }
  0xa0   : > { %658 = vmatmul.bf16.gmra.mxu1 %v1767_v28  ;;  %1120 = vmatmul.bf16.gmra.mxu3 %v1775_v29 }
  0xa2   : > { %1216 = vperm.xlu2 %1854, %v1186_v31   ;;  %1211 = vperm.xlu1 %1853, %v1185_v32  }
  0xa3   : > { %1206 = vperm.xlu0 %1852, %v1184_v33  }
  0xa4   : > { %v2403_v41 = vpop.permute.xlu2 %505 }
  0xaa   : > { %962 = vperm.xlu2 %1854, %v916_v35   ;;  %1221 = vperm.xlu1 %1853, %v1187_v36  }
  0xab   : > { %957 = vperm.xlu0 %1852, %v915_v37   ;;  %v2401_v40 = vpop.permute.xlu1 %475  ;;  %v2405_v42 = vpop.permute.xlu0 %465 }
  0xac   : > { %v2420_v48 = vpop.permute.xlu2 %520 }
  0xaf   : > { %614 = vmatmul.bf16.gmra.mxu0 %v1768_v38  ;;  %1076 = vmatmul.bf16.gmra.mxu2 %v1776_v39 }
  0xb0   : > { %663 = vmatmul.bf16.gmra.mxu1 %v1768_v38  ;;  %1125 = vmatmul.bf16.gmra.mxu3 %v1776_v39 }
  0xb2   : > { %1231 = vperm.xlu2 %1854, %v1189_v43   ;;  %967 = vperm.xlu1 %1853, %v917_v44  }
  0xb3   : > { %1226 = vperm.xlu0 %1852, %v1188_v45  }
  0xb4   : > { %v2416_v46 = vpop.permute.xlu1 %480  ;;  %v2444_v59 = vpop.permute.xlu2 %535 }
  0xb5   : > { %v2418_v47 = vpop.permute.xlu0 %470 }
  0xba   : > { %977 = vperm.xlu2 %1854, %v919_v49   ;;  %1236 = vperm.xlu1 %1853, %v1190_v50  }
  0xbb   : > { %972 = vperm.xlu0 %1852, %v918_v51  }
  0xbc   : > { %v2431_v54 = vpop.permute.xlu1 %500  ;;  %v2459_v3 = vpop.permute.xlu2 %744 }
  0xbd   : > { %v2433_v55 = vpop.permute.xlu0 %495 }
  0xbf   : > { %619 = vmatmul.bf16.gmra.mxu0 %v1769_v52  ;;  %1081 = vmatmul.bf16.gmra.mxu2 %v1777_v53 }
  0xc0   : > { %668 = vmatmul.bf16.gmra.mxu1 %v1769_v52  ;;  %1130 = vmatmul.bf16.gmra.mxu3 %v1777_v53 }
  0xc2   : > { %1246 = vperm.xlu2 %1854, %v1192_v56   ;;  %982 = vperm.xlu1 %1853, %v920_v57  }
  0xc3   : > { %1241 = vperm.xlu0 %1852, %v1191_v58  }
  0xc4   : > { %v2446_v60 = vpop.permute.xlu1 %515  ;;  %v2474_v10 = vpop.permute.xlu2 %759 }
  0xc5   : > { %v2448_v61 = vpop.permute.xlu0 %510 }
  0xca   : > { %992 = vperm.xlu2 %1854, %v922_v62   ;;  %1251 = vperm.xlu1 %1853, %v1193_v63  }
  0xcb   : > { %987 = vperm.xlu0 %1852, %v921_v0  }
  0xcc   : > { %v2461_v4 = vpop.permute.xlu1 %530  ;;  %v2489_v19 = vpop.permute.xlu2 %774 }
  0xcd   : > { %v2463_v5 = vpop.permute.xlu0 %525 }
  0xcf   : > { %624 = vmatmul.bf16.gmra.mxu0 %v1770_v1  ;;  %1086 = vmatmul.bf16.gmra.mxu2 %v1778_v2 }
  0xd0   : > { %673 = vmatmul.bf16.gmra.mxu1 %v1770_v1  ;;  %1135 = vmatmul.bf16.gmra.mxu3 %v1778_v2 }
  0xd2   : > { %1261 = vperm.xlu2 %1854, %v1195_v6   ;;  %997 = vperm.xlu1 %1853, %v923_v7  }
  0xd3   : > { %1256 = vperm.xlu0 %1852, %v1194_v8  }
  0xd4   : > { %v740_v9 = vpop.permute.xlu1 %739  ;;  %v2498_v25 = vpop.permute.xlu2 %789 }
  0xd5   : > { %v2476_v11 = vpop.permute.xlu0 %540 }
  0xd6   : > { %2788 = vst [vmem:[#allocation16_spill] sm:$0xff] %v2476_v11 }
  0xda   : > { %1271 = vperm.xlu2 %1854, %v1197_v12   ;;  %1266 = vperm.xlu1 %1853, %v1196_v13  }
  0xdb   : > { %1002 = vperm.xlu0 %1852, %v924_v14  }
  0xdc   : > { %v2487_v17 = vpop.permute.xlu1 %754  ;;  %v2504_v28 = vpop.permute.xlu2 %804 }
  0xdd   : > { %v750_v18 = vpop.permute.xlu0 %749  ;;  %2789 = vst [vmem:[#allocation17_spill] sm:$0xff] %v2504_v28 }
  0xdf   : > { %629 = vmatmul.bf16.gmra.mxu0 %v1771_v15  ;;  %1091 = vmatmul.bf16.gmra.mxu2 %v1779_v16 }
  0xe0   : > { %678 = vmatmul.bf16.gmra.mxu1 %v1771_v15  ;;  %1140 = vmatmul.bf16.gmra.mxu3 %v1779_v16 }
  0xe3   : > { %1276 = vperm.xlu0 %1852, %v1198_v20  }
  0xe4   : > { %v2494_v21 = vpop.permute.xlu1 %769  ;;  %v928_v39 = vpop.permute.xlu2 %927 }
  0xe5   : > { %v2496_v22 = vpop.permute.xlu0 %764 }
  0xec   : > { %v2500_v26 = vpop.permute.xlu1 %784  ;;  %v943_v1 = vpop.permute.xlu2 %942 }
  0xed   : > { %v2502_v27 = vpop.permute.xlu0 %779 }
  0xef   : > { %634 = vmatmul.bf16.gmra.mxu0 %v1772_v23  ;;  %1096 = vmatmul.bf16.gmra.mxu2 %v1780_v24 }
  0xf0   : > { %683 = vmatmul.bf16.gmra.mxu1 %v1772_v23  ;;  %1145 = vmatmul.bf16.gmra.mxu3 %v1780_v24 }
  0xf4   : > { %v2506_v29 = vpop.permute.xlu1 %799 }
  0xf5   : > { %2790 = vst [vmem:[#allocation18_spill] sm:$0xff] %v2506_v29  ;;  %v2508_v31 = vpop.permute.xlu0 %794 }
  0xfc   : > { %v600_v32 = vpop.f32.mrf.mxu0  ;;  %v2512_v38 = vpop.permute.xlu1 %814 }
  0xfd   : > { %v601_v33 = vadd.f32 %v600_v32, %v2405_v42  ;;  %v649_v35 = vpop.f32.mrf.mxu1  ;;  %2791 = vst [vmem:[#allocation19_spill] sm:$0xff] %v2512_v38  ;;  %v2514_v44 = vpop.permute.xlu0 %809 }
  0xfe   : > { %v650_v36 = vadd.f32 %v649_v35, %v2405_v42  ;;  %2792 = vst [vmem:[#allocation20_spill] sm:$0xff] %v2514_v44 }
  0xff   : > { %v689_v37 = vmax.f32 %v601_v33, 0.0 }
 0x100   : > { %v690_v43 = vmax.f32 %v650_v36, 0.0 }
 0x101   : > { %v817_v45 = vmul.f32 %v740_v9, %v689_v37 }
 0x102   : > { %v818_v49 = vmul.f32 %v740_v9, %v690_v43  ;;  %v1062_v50 = vpop.f32.mrf.mxu2 }
 0x103   : > { %v1111_v51 = vpop.f32.mrf.mxu3  ;;  %v1063_v20 = vadd.f32 %v1062_v50, %v928_v39 }
 0x104   : > { %v602_v52 = vpop.f32.mrf.mxu0  ;;  %v938_v62 = vpop.permute.xlu1 %937  ;;  %v1112_v32 = vadd.f32 %v1111_v51, %v928_v39 }
 0x105   : > { %v603_v53 = vadd.f32 %v602_v52, %v2418_v47  ;;  %v651_v56 = vpop.f32.mrf.mxu1  ;;  %v933_v63 = vpop.permute.xlu0 %932  ;;  %v1151_v52 = vmax.f32 %v1063_v20, 0.0 }
 0x106   : > { %v652_v57 = vadd.f32 %v651_v56, %v2418_v47 }
 0x107   : > { %v691_v58 = vmax.f32 %v603_v53, 0.0 }
 0x108   : > { %v692_v42 = vmax.f32 %v652_v57, 0.0 }
 0x109   : > { %v819_v0 = vmul.f32 %v2459_v3, %v691_v58  ;;  %v1152_v58 = vmax.f32 %v1112_v32, 0.0 }
 0x10a   : > { %v820_v2 = vmul.f32 %v2459_v3, %v692_v42  ;;  %v1064_v6 = vpop.f32.mrf.mxu2 }
 0x10b   : > { %v849_v7 = vadd.f32 %v819_v0, %v817_v45  ;;  %v1113_v8 = vpop.f32.mrf.mxu3  ;;  %v1065_v36 = vadd.f32 %v1064_v6, %v933_v63 }
 0x10c   : > { %v870_v9 = vadd.f32 %v820_v2, %v818_v49  ;;  %v605_v12 = vpop.f32.mrf.mxu0  ;;  %v2522_v16 = vpop.permute.xlu1 %952  ;;  %v1114_v37 = vadd.f32 %v1113_v8, %v933_v63 }
 0x10d   : > { %v606_v13 = vadd.f32 %v605_v12, %v2401_v40  ;;  %v654_v14 = vpop.f32.mrf.mxu1  ;;  %v2524_v24 = vpop.permute.xlu0 %947  ;;  %v1153_v39 = vmax.f32 %v1065_v36, 0.0 }
 0x10e   : > { %v655_v15 = vadd.f32 %v654_v14, %v2401_v40  ;;  %v1202_v49 = vpop.permute.xlu2 %1201  ;;  %v1154_v51 = vmax.f32 %v1114_v37, 0.0 }
 0x10f   : > { %v693_v47 = vmax.f32 %v606_v13, 0.0  ;;  %v1279_v6 = vmul.f32 %v1202_v49, %v1151_v52  ;;  %v1280_v13 = vmul.f32 %v1202_v49, %v1152_v58 }
 0x110   : > { %v694_v23 = vmax.f32 %v655_v15, 0.0 }
 0x111   : > { %v821_v33 = vmul.f32 %v750_v18, %v693_v47 }
 0x112   : > { %v822_v3 = vmul.f32 %v750_v18, %v694_v23  ;;  %v1067_v35 = vpop.f32.mrf.mxu2 }
 0x113   : > { %v850_v43 = vadd.f32 %v849_v7, %v821_v33  ;;  %v1116_v45 = vpop.f32.mrf.mxu3  ;;  %v1068_v56 = vadd.f32 %v1067_v35, %v938_v62 }
 0x114   : > { %v871_v53 = vadd.f32 %v870_v9, %v822_v3  ;;  %v1117_v40 = vadd.f32 %v1116_v45, %v938_v62  ;;  %v607_v57 = vpop.f32.mrf.mxu0  ;;  %v1212_v2 = vpop.permute.xlu1 %1211 }
 0x115   : > { %v608_v50 = vadd.f32 %v607_v57, %v2416_v46  ;;  %v656_v42 = vpop.f32.mrf.mxu1  ;;  %v1155_v63 = vmax.f32 %v1068_v56, 0.0  ;;  %v1207_v12 = vpop.permute.xlu0 %1206 }
 0x116   : > { %v657_v0 = vadd.f32 %v656_v42, %v2416_v46  ;;  %v1156_v7 = vmax.f32 %v1117_v40, 0.0  ;;  %v1281_v62 = vmul.f32 %v1207_v12, %v1153_v39  ;;  %v1282_v14 = vmul.f32 %v1207_v12, %v1154_v51  ;;  %v1217_v58 = vpop.permute.xlu2 %1216 }
 0x117   : > { %v695_v18 = vmax.f32 %v608_v50, 0.0  ;;  %v1283_v47 = vmul.f32 %v1212_v2, %v1155_v63 }
 0x118   : > { %v696_v8 = vmax.f32 %v657_v0, 0.0  ;;  %v1284_v20 = vmul.f32 %v1212_v2, %v1156_v7  ;;  %v1311_v32 = vadd.f32 %v1281_v62, %v1279_v6  ;;  %v1332_v33 = vadd.f32 %v1282_v14, %v1280_v13 }
 0x119   : > { %v823_v9 = vmul.f32 %v2487_v17, %v695_v18 }
 0x11a   : > { %v824_v15 = vmul.f32 %v2487_v17, %v696_v8  ;;  %v1069_v23 = vpop.f32.mrf.mxu2  ;;  %v1312_v52 = vadd.f32 %v1311_v32, %v1283_v47  ;;  %v1333_v56 = vadd.f32 %v1332_v33, %v1284_v20 }
 0x11b   : > { %v851_v46 = vadd.f32 %v850_v43, %v823_v9  ;;  %v1070_v3 = vadd.f32 %v1069_v23, %v943_v1  ;;  %v1118_v35 = vpop.f32.mrf.mxu3 }
 0x11c   : > { %v872_v36 = vadd.f32 %v871_v53, %v824_v15  ;;  %v1119_v37 = vadd.f32 %v1118_v35, %v943_v1  ;;  %v610_v45 = vpop.f32.mrf.mxu0  ;;  %v1222_v14 = vpop.permute.xlu1 %1221 }
 0x11d   : > { %v1157_v49 = vmax.f32 %v1070_v3, 0.0  ;;  %v611_v40 = vadd.f32 %v610_v45, %v2379_v30  ;;  %v659_v57 = vpop.f32.mrf.mxu1 }
 0x11e   : > { %v1158_v50 = vmax.f32 %v1119_v37, 0.0  ;;  %v660_v17 = vadd.f32 %v659_v57, %v2379_v30 }
 0x11f   : > { %v1285_v42 = vmul.f32 %v1217_v58, %v1157_v49  ;;  %v697_v0 = vmax.f32 %v611_v40, 0.0 }
 0x120   : > { %v1286_v43 = vmul.f32 %v1217_v58, %v1158_v50  ;;  %v698_v39 = vmax.f32 %v660_v17, 0.0  ;;  %v958_v58 = vpop.permute.xlu0 %957 }
 0x121   : > { %v1313_v51 = vadd.f32 %v1312_v52, %v1285_v42  ;;  %v825_v18 = vmul.f32 %v2474_v10, %v697_v0 }
 0x122   : > { %v1334_v53 = vadd.f32 %v1333_v56, %v1286_v43  ;;  %v826_v1 = vmul.f32 %v2474_v10, %v698_v39  ;;  %v1072_v2 = vpop.f32.mrf.mxu2  ;;  %v963_v43 = vpop.permute.xlu2 %962 }
 0x123   : > { %v852_v6 = vadd.f32 %v851_v46, %v825_v18  ;;  %v1073_v63 = vadd.f32 %v1072_v2, %v2524_v24  ;;  %v1121_v7 = vpop.f32.mrf.mxu3 }
 0x124   : > { %v873_v8 = vadd.f32 %v872_v36, %v826_v1  ;;  %v1122_v12 = vadd.f32 %v1121_v7, %v2524_v24  ;;  %v612_v13 = vpop.f32.mrf.mxu0  ;;  %v968_v1 = vpop.permute.xlu1 %967 }
 0x125   : > { %v1159_v30 = vmax.f32 %v1073_v63, 0.0  ;;  %v613_v9 = vadd.f32 %v612_v13, %v2390_v34  ;;  %v661_v62 = vpop.f32.mrf.mxu1 }
 0x126   : > { %v1160_v15 = vmax.f32 %v1122_v12, 0.0  ;;  %v662_v47 = vadd.f32 %v661_v62, %v2390_v34 }
 0x127   : > { %v1287_v20 = vmul.f32 %v1222_v14, %v1159_v30  ;;  %v699_v23 = vmax.f32 %v613_v9, 0.0 }
 0x128   : > { %v1288_v10 = vmul.f32 %v1222_v14, %v1160_v15  ;;  %v700_v32 = vmax.f32 %v662_v47, 0.0  ;;  %v1227_v39 = vpop.permute.xlu0 %1226 }
 0x129   : > { %v2538_v46 = vadd.f32 %v1313_v51, %v1287_v20  ;;  %v827_v33 = vmul.f32 %v2496_v22, %v699_v23 }
 0x12a   : > { %v2541_v3 = vadd.f32 %v1334_v53, %v1288_v10  ;;  %v828_v24 = vmul.f32 %v2496_v22, %v700_v32  ;;  %v1074_v35 = vpop.f32.mrf.mxu2  ;;  %v1232_v2 = vpop.permute.xlu2 %1231 }
 0x12b   : > { %v2544_v36 = vadd.f32 %v852_v6, %v827_v33  ;;  %v1123_v37 = vpop.f32.mrf.mxu3  ;;  %v1075_v13 = vadd.f32 %v1074_v35, %v2522_v16 }
 0x12c   : > { %v2546_v45 = vadd.f32 %v873_v8, %v828_v24  ;;  %v615_v52 = vpop.f32.mrf.mxu0  ;;  %v1124_v30 = vadd.f32 %v1123_v37, %v2522_v16  ;;  %v2556_v9 = vpop.permute.xlu1 %1236 }
 0x12d   : > { %v664_v34 = vpop.f32.mrf.mxu1  ;;  %v616_v62 = vadd.f32 %v615_v52, %v2433_v55  ;;  %v1161_v20 = vmax.f32 %v1075_v13, 0.0 }
 0x12e   : > { %v665_v15 = vadd.f32 %v664_v34, %v2433_v55  ;;  %v1162_v32 = vmax.f32 %v1124_v30, 0.0 }
 0x12f   : > { %v701_v35 = vmax.f32 %v616_v62, 0.0  ;;  %v1289_v55 = vmul.f32 %v1227_v39, %v1161_v20 }
 0x130   : > { %v973_v7 = vpop.permute.xlu0 %972  ;;  %v702_v52 = vmax.f32 %v665_v15, 0.0  ;;  %v1290_v44 = vmul.f32 %v1227_v39, %v1162_v32 }
 0x131   : > { %v1315_v15 = vadd.f32 %v2538_v46, %v1289_v55 }
 0x132   : > { %v1077_v56 = vpop.f32.mrf.mxu2  ;;  %v2559_v14 = vpop.permute.xlu2 %977 }
 0x133   : > { %v1126_v49 = vpop.f32.mrf.mxu3  ;;  %v1078_v23 = vadd.f32 %v1077_v56, %v958_v58  ;;  %v829_v56 = vmul.f32 %v2494_v21, %v701_v35 }
 0x134   : > { %v617_v40 = vpop.f32.mrf.mxu0  ;;  %v1127_v33 = vadd.f32 %v1126_v49, %v958_v58  ;;  %v830_v49 = vmul.f32 %v2494_v21, %v702_v52  ;;  %v2574_v62 = vpop.permute.xlu1 %982 }
 0x135   : > { %v666_v57 = vpop.f32.mrf.mxu1  ;;  %v618_v16 = vadd.f32 %v617_v40, %v2431_v54  ;;  %v1163_v34 = vmax.f32 %v1078_v23, 0.0 }
 0x136   : > { %v667_v38 = vadd.f32 %v666_v57, %v2431_v54  ;;  %v1164_v13 = vmax.f32 %v1127_v33, 0.0 }
 0x137   : > { %v703_v28 = vmax.f32 %v618_v16, 0.0  ;;  %v1291_v54 = vmul.f32 %v1232_v2, %v1163_v34 }
 0x138   : > { %v1242_v11 = vpop.permute.xlu0 %1241  ;;  %v704_v58 = vmax.f32 %v667_v38, 0.0  ;;  %v1292_v32 = vmul.f32 %v1232_v2, %v1164_v13 }
 0x13a   : > { %v1079_v50 = vpop.f32.mrf.mxu2  ;;  %v1247_v23 = vpop.permute.xlu2 %1246 }
 0x13b   : > { %v1128_v17 = vpop.f32.mrf.mxu3  ;;  %v1080_v30 = vadd.f32 %v1079_v50, %v963_v43  ;;  %v1336_v50 = vadd.f32 %v2541_v3, %v1290_v44  ;;  %v1316_v44 = vadd.f32 %v1315_v15, %v1291_v54 }
 0x13c   : > { %v620_v42 = vpop.f32.mrf.mxu0  ;;  %v1129_v40 = vadd.f32 %v1128_v17, %v963_v43  ;;  %v854_v17 = vadd.f32 %v2544_v36, %v829_v56  ;;  %v831_v43 = vmul.f32 %v2489_v19, %v703_v28 }
 0x13d   : > { %v669_v0 = vpop.f32.mrf.mxu1  ;;  %v621_v57 = vadd.f32 %v620_v42, %v2403_v41  ;;  %v1165_v35 = vmax.f32 %v1080_v30, 0.0  ;;  %v875_v42 = vadd.f32 %v2546_v45, %v830_v49 }
 0x13e   : > { %v670_v39 = vadd.f32 %v669_v0, %v2403_v41  ;;  %v832_v41 = vmul.f32 %v2489_v19, %v704_v58  ;;  %v1166_v0 = vmax.f32 %v1129_v40, 0.0  ;;  %v1252_v40 = vpop.permute.xlu1 %1251 }
 0x13f   : > { %v705_v3 = vmax.f32 %v621_v57, 0.0  ;;  %v1293_v34 = vmul.f32 %v2556_v9, %v1165_v35 }
 0x140   : > { %v2590_v2 = vpop.permute.xlu0 %987  ;;  %v876_v13 = vadd.f32 %v875_v42, %v832_v41 }
 0x141   : > { %v833_v30 = vmul.f32 %v2502_v27, %v705_v3 }
 0x142   : > { %v1082_v22 = vpop.f32.mrf.mxu2 }
 0x143   : > { %v1131_v51 = vpop.f32.mrf.mxu3  ;;  %v1083_v21 = vadd.f32 %v1082_v22, %v968_v1  ;;  %v706_v22 = vmax.f32 %v670_v39, 0.0  ;;  %v1317_v39 = vadd.f32 %v1316_v44, %v1293_v34 }
 0x144   : > { %v622_v18 = vpop.f32.mrf.mxu0  ;;  %v1132_v38 = vadd.f32 %v1131_v51, %v968_v1  ;;  %v1337_v1 = vadd.f32 %v1336_v50, %v1292_v32  ;;  %v993_v32 = vpop.permute.xlu2 %992 }
 0x145   : > { %v671_v53 = vpop.f32.mrf.mxu1  ;;  %v623_v46 = vadd.f32 %v622_v18, %v2448_v61  ;;  %v1167_v36 = vmax.f32 %v1083_v21, 0.0  ;;  %v855_v18 = vadd.f32 %v854_v17, %v831_v43  ;;  %v834_v49 = vmul.f32 %v2502_v27, %v706_v22 }
 0x146   : > { %v672_v52 = vadd.f32 %v671_v53, %v2448_v61  ;;  %v1168_v28 = vmax.f32 %v1132_v38, 0.0  ;;  %v1294_v61 = vmul.f32 %v2556_v9, %v1166_v0 }
 0x147   : > { %v707_v45 = vmax.f32 %v623_v46, 0.0  ;;  %v1295_v15 = vmul.f32 %v1242_v11, %v1167_v36  ;;  %v856_v17 = vadd.f32 %v855_v18, %v833_v30  ;;  %v877_v43 = vadd.f32 %v876_v13, %v834_v49 }
 0x148   : > { %v708_v53 = vmax.f32 %v672_v52, 0.0  ;;  %v1338_v21 = vadd.f32 %v1337_v1, %v1294_v61 }
 0x149   : > { %v1318_v35 = vadd.f32 %v1317_v39, %v1295_v15 }
 0x14a   : > { %v1084_v6 = vpop.f32.mrf.mxu2 }
 0x14b   : > { %v2548_v63 = vpop.f32.mrf.mxu3  ;;  %v1085_v51 = vadd.f32 %v1084_v6, %v973_v7 }
 0x14c   : > { %v2550_v8 = vpop.f32.mrf.mxu0  ;;  %v1134_v55 = vadd.f32 %v2548_v63, %v973_v7 }
 0x14d   : > { %v2552_v12 = vpop.f32.mrf.mxu1  ;;  %v626_v19 = vadd.f32 %v2550_v8, %v2446_v60  ;;  %v1169_v63 = vmax.f32 %v1085_v51, 0.0  ;;  %v1296_v8 = vmul.f32 %v1242_v11, %v1168_v28 }
 0x14e   : > { %v675_v6 = vadd.f32 %v2552_v12, %v2446_v60  ;;  %v1170_v54 = vmax.f32 %v1134_v55, 0.0  ;;  %v835_v60 = vmul.f32 %v2500_v26, %v707_v45 }
 0x14f   : > { %v709_v12 = vmax.f32 %v626_v19, 0.0  ;;  %v1339_v46 = vadd.f32 %v1338_v21, %v1296_v8 }
 0x150   : > { %v710_v38 = vmax.f32 %v675_v6, 0.0  ;;  %v1298_v42 = vmul.f32 %v1247_v23, %v1170_v54  ;;  %v857_v0 = vadd.f32 %v856_v17, %v835_v60 }
 0x152   : > { %v2562_v47 = vpop.f32.mrf.mxu2  ;;  %v838_v22 = vmul.f32 %v2498_v25, %v710_v38  ;;  %v1340_v18 = vadd.f32 %v1339_v46, %v1298_v42  ;;  %v2794_v38 = vld [vmem:[#allocation17_spill] sm:$0xff] }
 0x153   : > { %v2564_v10 = vpop.f32.mrf.mxu3  ;;  %v1088_v7 = vadd.f32 %v2562_v47, %v2559_v14  ;;  %v836_v47 = vmul.f32 %v2500_v26, %v708_v53  ;;  %v1257_v26 = vpop.permute.xlu0 %1256 }
 0x154   : > { %v2566_v24 = vpop.f32.mrf.mxu0  ;;  %v1137_v9 = vadd.f32 %v2564_v10, %v2559_v14  ;;  %v1297_v14 = vmul.f32 %v1247_v23, %v1169_v63  ;;  %v998_v53 = vpop.permute.xlu1 %997 }
 0x155   : > { %v2569_v37 = vpop.f32.mrf.mxu1  ;;  %v628_v27 = vadd.f32 %v2566_v24, %v2420_v48  ;;  %v1171_v10 = vmax.f32 %v1088_v7, 0.0  ;;  %v837_v24 = vmul.f32 %v2498_v25, %v709_v12  ;;  %v878_v3 = vadd.f32 %v877_v43, %v836_v47 }
 0x156   : > { %v677_v11 = vadd.f32 %v2569_v37, %v2420_v48  ;;  %v1172_v41 = vmax.f32 %v1137_v9, 0.0  ;;  %v1319_v1 = vadd.f32 %v1318_v35, %v1297_v14 }
 0x157   : > { %v711_v52 = vmax.f32 %v628_v27, 0.0  ;;  %v1299_v36 = vmul.f32 %v1252_v40, %v1171_v10  ;;  %v858_v19 = vadd.f32 %v857_v0, %v837_v24  ;;  %v2795_v0 = vld [vmem:[#allocation20_spill] sm:$0xff] }
 0x158   : > { %v712_v51 = vmax.f32 %v677_v11, 0.0  ;;  %v1300_v34 = vmul.f32 %v1252_v40, %v1172_v41 }
 0x159   : > { %v1320_v63 = vadd.f32 %v1319_v1, %v1299_v36 }
 0x15a   : > { %v2576_v29 = vpop.f32.mrf.mxu2  ;;  %v840_v6 = vmul.f32 %v2508_v31, %v712_v51  ;;  %v1341_v40 = vadd.f32 %v1340_v18, %v1300_v34 }
 0x15b   : > { %v2581_v20 = vpop.f32.mrf.mxu3  ;;  %v1090_v23 = vadd.f32 %v2576_v29, %v2574_v62  ;;  %v879_v29 = vadd.f32 %v878_v3, %v838_v22  ;;  %v1003_v14 = vpop.permute.xlu0 %1002 }
 0x15c   : > { %v630_v33 = vpop.f32.mrf.mxu0 }
 0x15d   : > { %v679_v16 = vpop.f32.mrf.mxu1  ;;  %v631_v44 = vadd.f32 %v630_v33, %v2463_v5  ;;  %v1139_v33 = vadd.f32 %v2581_v20, %v2574_v62  ;;  %v1173_v7 = vmax.f32 %v1090_v23, 0.0  ;;  %v1262_v20 = vpop.permute.xlu2 %1261 }
 0x15e   : > { %v680_v48 = vadd.f32 %v679_v16, %v2463_v5  ;;  %v839_v5 = vmul.f32 %v2508_v31, %v711_v52  ;;  %v880_v31 = vadd.f32 %v879_v29, %v840_v6  ;;  %v1267_v23 = vpop.permute.xlu1 %1266 }
 0x15f   : > { %v713_v16 = vmax.f32 %v631_v44, 0.0  ;;  %v1174_v15 = vmax.f32 %v1139_v33, 0.0  ;;  %v1301_v47 = vmul.f32 %v1257_v26, %v1173_v7 }
 0x160   : > { %v714_v30 = vmax.f32 %v680_v48, 0.0  ;;  %v859_v9 = vadd.f32 %v858_v19, %v839_v5  ;;  %v2797_v19 = vld [vmem:[#allocation19_spill] sm:$0xff] }
 0x161   : > { %v1321_v33 = vadd.f32 %v1320_v63, %v1301_v47 }
 0x162   : > { %v1092_v56 = vpop.f32.mrf.mxu2 }
 0x163   : > { %v1141_v58 = vpop.f32.mrf.mxu3  ;;  %v1093_v62 = vadd.f32 %v1092_v56, %v2590_v2 }
 0x164   : > { %v632_v57 = vpop.f32.mrf.mxu0  ;;  %v1142_v8 = vadd.f32 %v1141_v58, %v2590_v2  ;;  %v1302_v2 = vmul.f32 %v1257_v26, %v1174_v15 }
 0x165   : > { %v681_v50 = vpop.f32.mrf.mxu1  ;;  %v633_v28 = vadd.f32 %v632_v57, %v2461_v4  ;;  %v2793_v57 = vld [vmem:[#allocation18_spill] sm:$0xff]  ;;  %v1175_v56 = vmax.f32 %v1093_v62, 0.0 }
 0x166   : > { %v682_v45 = vadd.f32 %v681_v50, %v2461_v4  ;;  %v841_v39 = vmul.f32 %v2793_v57, %v713_v16  ;;  %v842_v27 = vmul.f32 %v2793_v57, %v714_v30  ;;  %v1176_v58 = vmax.f32 %v1142_v8, 0.0  ;;  %v1272_v16 = vpop.permute.xlu2 %1271 }
 0x167   : > { %v715_v4 = vmax.f32 %v633_v28, 0.0 }
 0x168   : > { %v716_v54 = vmax.f32 %v682_v45, 0.0  ;;  %v860_v42 = vadd.f32 %v859_v9, %v841_v39  ;;  %v881_v3 = vadd.f32 %v880_v31, %v842_v27  ;;  %v1304_v28 = vmul.f32 %v1262_v20, %v1176_v58  ;;  %v1277_v39 = vpop.permute.xlu0 %1276 }
 0x169   : > { %v843_v11 = vmul.f32 %v2794_v38, %v715_v4 }
 0x16a   : > { %v1094_v37 = vpop.f32.mrf.mxu2  ;;  %v844_v10 = vmul.f32 %v2794_v38, %v716_v54 }
 0x16b   : > { %v1143_v55 = vpop.f32.mrf.mxu3  ;;  %v1095_v60 = vadd.f32 %v1094_v37, %v993_v32  ;;  %v1303_v37 = vmul.f32 %v1262_v20, %v1175_v56  ;;  %v861_v26 = vadd.f32 %v860_v42, %v843_v11 }
 0x16c   : > { %v635_v25 = vpop.f32.mrf.mxu0 }
 0x16d   : > { %v636_v13 = vadd.f32 %v635_v25, %v2444_v59  ;;  %v684_v61 = vpop.f32.mrf.mxu1  ;;  %v1177_v41 = vmax.f32 %v1095_v60, 0.0  ;;  %v1322_v30 = vadd.f32 %v1321_v33, %v1303_v37 }
 0x16e   : > { %v685_v49 = vadd.f32 %v684_v61, %v2444_v59  ;;  %v1144_v59 = vadd.f32 %v1143_v55, %v993_v32  ;;  %v2796_v32 = vld [vmem:[#allocation16_spill] sm:$0xff]  ;;  %v882_v55 = vadd.f32 %v881_v3, %v844_v10 }
 0x16f   : > { %v717_v12 = vmax.f32 %v636_v13, 0.0  ;;  %v1305_v45 = vmul.f32 %v1267_v23, %v1177_v41  ;;  %v1342_v13 = vadd.f32 %v1341_v40, %v1302_v2 }
 0x170   : > { %v718_v50 = vmax.f32 %v685_v49, 0.0  ;;  %v1178_v22 = vmax.f32 %v1144_v59, 0.0 }
 0x171   : > { %v845_v24 = vmul.f32 %v2795_v0, %v717_v12  ;;  %v1343_v20 = vadd.f32 %v1342_v13, %v1304_v28  ;;  %v1323_v54 = vadd.f32 %v1322_v30, %v1305_v45 }
 0x172   : > { %v1097_v21 = vpop.f32.mrf.mxu2  ;;  %v846_v51 = vmul.f32 %v2795_v0, %v718_v50  ;;  %v1306_v61 = vmul.f32 %v1267_v23, %v1178_v22  ;;  %v1365_v23 = vlaneseq }
 0x173   : > { %v1098_v17 = vadd.f32 %v1097_v21, %v998_v53  ;;  %v1146_v43 = vpop.f32.mrf.mxu3  ;;  %v862_v25 = vadd.f32 %v861_v26, %v845_v24 }
 0x174   : > { %v1147_v35 = vadd.f32 %v1146_v43, %v998_v53  ;;  %v637_v46 = vpop.f32.mrf.mxu0  ;;  %v883_v53 = vadd.f32 %v882_v55, %v846_v51  ;;  %v1344_v60 = vadd.f32 %v1343_v20, %v1306_v61  ;;  %vm2645_vm1 = vcmp.lt.s32.totalorder %v1365_v23, 256 }
 0x175   : > { %v638_v52 = vadd.f32 %v637_v46, %v2796_v32  ;;  %v686_v44 = vpop.f32.mrf.mxu1  ;;  %v1179_v1 = vmax.f32 %v1098_v17, 0.0 }
 0x176   : > { %v687_v48 = vadd.f32 %v686_v44, %v2796_v32  ;;  %v1180_v18 = vmax.f32 %v1147_v35, 0.0 }
 0x177   : > { %v719_v36 = vmax.f32 %v638_v52, 0.0  ;;  %v1307_v49 = vmul.f32 %v1272_v16, %v1179_v1 }
 0x178   : > { %v720_v34 = vmax.f32 %v687_v48, 0.0  ;;  %v1308_v15 = vmul.f32 %v1272_v16, %v1180_v18  ;;  %v1356_v48 = vstv %s1355_s4  ;;  %s1494_s4 = scalar_lea.hbm %s2769_s6, %s1761_s28 }
 0x179   : > { %v847_v5 = vmul.f32 %v2797_v19, %v719_v36  ;;  %v1324_v31 = vadd.f32 %v1323_v54, %v1307_v49 }
 0x17a   : > { %v848_v29 = vmul.f32 %v2797_v19, %v720_v34  ;;  %v1099_v6 = vpop.f32.mrf.mxu2  ;;  %v1345_v50 = vadd.f32 %v1344_v60, %v1308_v15 }
 0x17b   : > { %v863_v7 = vadd.f32 %v862_v25, %v847_v5  ;;  %v1100_v62 = vadd.f32 %v1099_v6, %v1003_v14  ;;  %v1148_v4 = vpop.f32.mrf.mxu3 }
 0x17c   : > { %v884_v8 = vadd.f32 %v883_v53, %v848_v29  ;;  %v1149_v63 = vadd.f32 %v1148_v4, %v1003_v14 }
 0x17d   : > { %v864_v9 = vrot.slane %v863_v7, 4  ;;  %v1181_v57 = vmax.f32 %v1100_v62, 0.0 }
 0x17e   : > { %v885_v40 = vrot.slane %v884_v8, 4  ;;  %v1182_v12 = vmax.f32 %v1149_v63, 0.0 }
 0x17f   : > { %v865_v27 = vadd.f32 %v864_v9, %v863_v7  ;;  %v1309_v59 = vmul.f32 %v1277_v39, %v1181_v57 }
 0x180   : > { %v886_v21 = vadd.f32 %v885_v40, %v884_v8  ;;  %v1310_v47 = vmul.f32 %v1277_v39, %v1182_v12 }
 0x181   : > { %v866_v56 = vrot.slane %v865_v27, 2  ;;  %v1325_v38 = vadd.f32 %v1324_v31, %v1309_v59 }
 0x182   : > { %v887_v11 = vrot.slane %v886_v21, 2  ;;  %v1346_v17 = vadd.f32 %v1345_v50, %v1310_v47 }
 0x183   : > { %v1326_v43 = vrot.slane %v1325_v38, 4  ;;  %v867_v14 = vadd.f32 %v866_v56, %v865_v27 }
 0x184   : > { %v1347_v2 = vrot.slane %v1346_v17, 4  ;;  %v888_v10 = vadd.f32 %v887_v11, %v886_v21 }
 0x185   : > { %v1327_v58 = vadd.f32 %v1326_v43, %v1325_v38  ;;  %v868_v41 = vrot.slane %v867_v14, 1  ;;  %v1419_v38 = vand.u32 127, %v1365_v23 }
 0x186   : > { %v1348_v35 = vadd.f32 %v1347_v2, %v1346_v17  ;;  %v889_v24 = vrot.slane %v888_v10, 1  ;;  %v1408_v2 = vld [vmem:[%s326_s16] sm:$0x3]  ;;  %s1947_s16 = scalar_lea.hbm %s1946_s12, 2 }
 0x187   : > { %v1328_v46 = vrot.slane %v1327_v58, 2  ;;  %v869_v3 = vadd.f32 %v868_v41, %v867_v14  ;;  %p1948_p3 = scmp.ne.s32.totalorder %s1946_s12, %s1947_s16 }
 0x188   : > { %v1349_v42 = vrot.slane %v1348_v35, 2  ;;  %v890_v51 = vadd.f32 %v889_v24, %v888_v10 }
 0x189   : > { %v1329_v0 = vadd.f32 %v1328_v46, %v1327_v58  ;;  %p1949_p5 = pnand %p1948_p3, %p2176_p13 }
 0x18a   : > { %v1350_v32 = vadd.f32 %v1349_v42, %v1348_v35  ;;  %v1420_v42 = vadd.s32 128, %v1419_v38 }
 0x18b   : > { %v1330_v52 = vrot.slane %v1329_v0, 1  ;;  %p1950_p12 = pneg %p1949_p5 }
 0x18c   : > { %v1351_v44 = vrot.slane %v1350_v32, 1 }
 0x18d   : > { %v1331_v22 = vadd.f32 %v1330_v52, %v1329_v0  ;;  %v1422_v0 = vstv %s1758_s24  ;;  %v2067_v52 = vmov 0.0   ;;  %s2697_s24 = scalar_lea.sflag [#allocation10], %s1479_s19 }
 0x18e   : > { %v1352_v37 = vadd.f32 %v1351_v44, %v1350_v32 }
 0x18f   : > { %v1353_v26 = vadd.f32 %v1331_v22, %v869_v3 }
 0x190   : > { %v1354_v1 = vadd.f32 %v1352_v37, %v890_v51  ;;  %v1423_v37 = vadd.s32 %v1422_v0, %v1419_v38 }
 0x191   : > { %v2637_v36 = vadd.f32 %v1356_v48, %v1353_v26  ;;  %v1424_v26 = vadd.s32 %v1422_v0, %v1420_v42 }
 0x192   : > { %v2639_v28 = vadd.f32 %v1356_v48, %v1354_v1 }
 0x193   : > { %v1755_v55 = vmul.f32 -1.442695, %v2637_v36  ;;  %v1438_v18 = vand.u32 2147483647, %v2637_v36 }
 0x194   : > { %v1756_v34 = vmul.f32 -1.442695, %v2639_v28  ;;  %v1439_v33 = vand.u32 2147483647, %v2639_v28  ;;  %v1361_v19 = vrot.slane %v2639_v28, 7 }
 0x195   : > { %1855 = vpow2.f32 %v1755_v55  ;;  %v1440_v45 = vsub.f32 0.0, %v1438_v18  ;;  %v1427_v55 = vmax.f32 %v2637_v36, 0.0  ;;  %v1428_v18 = vmax.f32 %v2639_v28, 0.0 }
 0x196   : > { %1857 = vpow2.f32 %v1756_v34  ;;  %v1363_v5 = vsel %vm1362_vm0, %v2637_v36, %v1361_v19  ;;  %v1441_v16 = vsub.f32 0.0, %v1439_v33 }
 0x197   : > { %1369 = vst.msk [vmem:[%s2778_s11] sm:$0x3] %vm2645_vm1, %v1363_v5  ;;  %v1442_v13 = vmul.f32 1.442695, %v1440_v45  ;;  %s1951_s11 = scalar_lea.hbm %s2770_s7, 4 }
 0x198   : > { %v1444_v29 = vmul.f32 1.442695, %v1441_v16  ;;  %p1953_p7 = scmp.lt.s32.totalorder %s1951_s11, %s1947_s16 }
 0x199   : > { %1859 = vpow2.f32 %v1442_v13 }
 0x19a   : > { %p1954_p9 = por %p1953_p7, %p1952_p8 }
 0x19b   : > { %v1856_v61 = vpop.eup %1855 }
 0x19c   : > { %v1858_v53 = vpop.eup %1857  ;;  %v1376_v6 = vadd.f32 1.0, %v1856_v61  ;;  %p1955_p10 = pnand %p1954_p9, %p1950_p12 }
 0x19d   : > { %v1377_v30 = vadd.f32 1.0, %v1858_v53 }
 0x19e   : > { %1861 = vrcp.f32 %v1376_v6  ;;  %vm1383_vm4 = vweird.f32 %v1376_v6  ;;  %v1389_v31 = vand.u32 2147483648, %v1376_v6  ;;  %v1387_v59 = vand.u32 2147483647, %v1376_v6 }
 0x19f   : > { %1863 = vrcp.f32 %v1377_v30  ;;  %v2657_v49 = vpop.eup %1859  ;;  %v1404_v57 = vand.u32 2147483648, %v1377_v30  ;;  %v1402_v40 = vand.u32 2147483647, %v1377_v30  ;;  %vm1398_vm6 = vweird.f32 %v1377_v30 }
 0x1a0   : > { %1865 = vpow2.f32 %v1444_v29  ;;  %v1446_v54 = vadd.f32 1.0, %v2657_v49  ;;  %v1390_v11 = vor.u32 1.1754944e-38, %v1389_v31  ;;  %v1449_v43 = vmul.f32 -0.5, %v2657_v49 }
 0x1a1   : > { %v1405_v21 = vor.u32 1.1754944e-38, %v1404_v57  ;;  %vm1403_vm8 = vcmp.eq.f32.partialorder %v1402_v40, 8.507059e+37  ;;  %vm1388_vm9 = vcmp.eq.f32.partialorder %v1387_v59, 8.507059e+37  ;;  %v1452_v32 = vand.u32 2147483647, %v2657_v49 }
 0x1a2   : > { %1867 = vlog2.f32 %v1446_v54  ;;  %v1450_v24 = vadd.f32 1.0, %v1449_v43 }
 0x1a4   : > { %v1862_v7 = vpop.eup %1861  ;;  %v1451_v45 = vmul.f32 %v2657_v49, %v1450_v24 }
 0x1a5   : > { %v1864_v62 = vpop.eup %1863  ;;  %v1379_v4 = vmul.f32 %v1862_v7, %v1376_v6  ;;  %vm1384_vm2 = vweird.f32 %v1862_v7 }
 0x1a6   : > { %v2659_v20 = vpop.eup %1865  ;;  %v1394_v15 = vmul.f32 %v1864_v62, %v1377_v30  ;;  %vm1399_vm3 = vweird.f32 %v1864_v62  ;;  %vm2663_vm5 = vmor %vm1383_vm4, %vm1384_vm2 }
 0x1a7   : > { %v1380_v8 = vsub.f32 1.0, %v1379_v4  ;;  %v1455_v39 = vadd.f32 1.0, %v2659_v20  ;;  %vm1400_vm7 = vmor %vm1398_vm6, %vm1399_vm3  ;;  %v1458_v58 = vmul.f32 -0.5, %v2659_v20  ;;  %v1461_v22 = vand.u32 2147483647, %v2659_v20 }
 0x1a8   : > { %v1395_v63 = vsub.f32 1.0, %v1394_v15  ;;  %v1868_v35 = vpop.eup %1867 }
 0x1a9   : > { %v1381_v9 = vmul.f32 %v1862_v7, %v1380_v8  ;;  %1869 = vlog2.f32 %v1455_v39  ;;  %v1459_v3 = vadd.f32 1.0, %v1458_v58  ;;  %v1448_v1 = vmul.f32 0.6931472, %v1868_v35 }
 0x1aa   : > { %v1396_v60 = vmul.f32 %v1864_v62, %v1395_v63 }
 0x1ab   : > { %v1382_v12 = vadd.f32 %v1862_v7, %v1381_v9  ;;  %v1460_v25 = vmul.f32 %v2659_v20, %v1459_v3 }
 0x1ac   : > { %v1397_v50 = vadd.f32 %v1864_v62, %v1396_v60 }
 0x1ad   : > { %v1386_v47 = vsel %vm2663_vm5, %v1862_v7, %v1382_v12 }
 0x1ae   : > { %v1401_v56 = vsel %vm1400_vm7, %v1864_v62, %v1397_v50  ;;  %v1391_v10 = vsel %vm1388_vm9, %v1390_v11, %v1386_v47 }
 0x1af   : > { %v1406_v17 = vsel %vm1403_vm8, %v1405_v21, %v1401_v56  ;;  %v1870_v41 = vpop.eup %1869 }
 0x1b0   : > { %v1411_v14 = vrot.slane %v1406_v17, 7  ;;  %v1457_v23 = vmul.f32 0.6931472, %v1870_v41 }
 0x1b2   : > { %v1412_v46 = vsel %vm1362_vm0, %v1391_v10, %v1411_v14 }
 0x1b3   : > { %vm1414_vm10 = vcmp.lt.f32.partialorder %v1408_v2, %v1412_v46 }
 0x1b4   : > { %v1757_v44 = vsel %vm1414_vm10, 1.0, %v2067_v52 }
 0x1b5   : > { %v1430_v51 = vperm.slane %v1757_v44, 0  ;;  %v1431_v48 = vperm.slane %v1757_v44, 1  ;;  %1417 = vst.msk [vmem:[%s367_s14] sm:$0x3] %vm2645_vm1, %v1757_v44 }
 0x1b7   : > { %v1434_v34 = vmul.f32 %v1430_v51, %v2637_v36  ;;  %v1435_v33 = vmul.f32 %v1431_v48, %v2639_v28 }
 0x1b8   : > { %1958 = shalt.err (!%p1955_p10)
}
 0x1b9   : > { %1788 = dma.vmem_to_hbm [thread:$0]  (%p2176_p13), %s1511_s22, 32, %s1513_s17, %s2697_s24   ;;  %v1436_v36 = vsub.f32 %v1427_v55, %v1434_v34  ;;  %v1437_v28 = vsub.f32 %v1428_v18, %v1435_v33  ;;  %vm1453_vm11 = vcmp.lt.f32.partialorder %v1452_v32, 0.0004427343  ;;  %vm1462_vm12 = vcmp.lt.f32.partialorder %v1461_v22, 0.0004427343 }
 0x1ba   : > { %s2802_s28 = scalar_lea.vmem [#allocation8], %s2216_s1  ;;  %s1498_s21 = sshll.u32 %s1494_s4, 4  ;;  %vm1425_vm13 = vcmp.lt.s32.totalorder %v1423_v37, 500  ;;  %vm1426_vm14 = vcmp.lt.s32.totalorder %v1424_v26, 500  ;;  %v1454_v19 = vsel %vm1453_vm11, %v1451_v45, %v1448_v1  ;;  %v1463_v5 = vsel %vm1462_vm12, %v1460_v25, %v1457_v23  ;;  %s1499_s21 = int_to_ptr.hbm [resolvable:$true] %s1498_s21 }
 0x1bb   : > { %s1496_s19 = sshll.u32 %s2802_s28, 4  ;;  %v1464_v16 = vadd.f32 %v1454_v19, %v1436_v36  ;;  %v1465_v13 = vadd.f32 %v1463_v5, %v1437_v28  ;;  %s1475_s0 = scalar_lea.sflag [#allocation5], %s2213_s26  ;;  %s1497_s19 = int_to_ptr.vmem [resolvable:$true] %s1496_s19 }
 0x1bc   : > { %s1973_s11 = sshra.s32 %s1499_s21, 4  ;;  %s1979_s4 = scalar_lea.hbm %s2769_s6, 4  ;;  %s1974_s11 = int_to_ptr.hbm [resolvable:$true] %s1973_s11 }
 0x1bd   : > { %s1975_s22 = scalar_lea.hbm %s1974_s11, 2  ;;  %p1980_p6 = scmp.lt.s32.totalorder %s1974_s11, %s2769_s6 }
 0x1be   : > { %p1976_p11 = scmp.ne.s32.totalorder %s1974_s11, %s1975_s22  ;;  %p1981_p1 = scmp.lt.s32.totalorder %s1979_s4, %s1975_s22 }
 0x1c0   : > { %p1977_p0 = pnand %p1976_p11, %p2176_p13  ;;  %p1982_p3 = por %p1981_p1, %p1980_p6 }
 0x1c2   : > { %p1978_p2 = pneg %p1977_p0 }
 0x1c4   : > { %p1983_p5 = pnand %p1982_p3, %p1978_p2 }
 0x1c6   : > { %1986 = shalt.err (!%p1983_p5)
}
 0x1c7   : > { %1787 = dma.vmem_to_hbm [thread:$0]  (%p2176_p13), %s1497_s19, 32, %s1499_s21, %s1475_s0   ;;  %v1466_v61 = vsel %vm1425_vm13, %v1464_v16, 0.0  ;;  %v1467_v53 = vsel %vm1426_vm14, %v1465_v13, 0.0 }
 0x1c8   : > { %v1468_v29 = vsel %vm1362_vm0, %v1466_v61, 0.0  ;;  %v1469_v6 = vsel %vm1362_vm0, %v1467_v53, 0.0  ;;  %s1521_s18 = scalar_lea.hbm %s2771_s8, %s2140_s13  ;;  %s373_s28 = scalar_lea.vmem [#allocation11], %s2213_s26 }
 0x1c9   : > { %v1470_v30 = vadd.f32 %v1469_v6, %v1468_v29  ;;  %s1523_s11 = sshll.u32 %s373_s28, 4  ;;  %s1525_s22 = sshll.u32 %s1521_s18, 4  ;;  %s1524_s11 = int_to_ptr.vmem [resolvable:$true] %s1523_s11  ;;  %s1526_s22 = int_to_ptr.hbm [resolvable:$true] %s1525_s22 }
 0x1ca   : > { %s2001_s19 = sshra.s32 %s1526_s22, 4  ;;  %s2007_s17 = scalar_lea.hbm %s2771_s8, 2  ;;  %s2002_s19 = int_to_ptr.hbm [resolvable:$true] %s2001_s19 }
 0x1cb   : > { %1471 = vadd.xlane.f32.xlu1 %v1470_v30  ;;  %s2003_s21 = scalar_lea.hbm %s2002_s19, 1  ;;  %p2008_p9 = scmp.lt.s32.totalorder %s2002_s19, %s2771_s8 }
 0x1cc   : > { %p2004_p12 = scmp.ne.s32.totalorder %s2002_s19, %s2003_s21  ;;  %p2009_p10 = scmp.lt.s32.totalorder %s2007_s17, %s2003_s21 }
 0x1ce   : > { %p2005_p8 = pnand %p2004_p12, %p2176_p13  ;;  %p2010_p11 = por %p2009_p10, %p2008_p9 }
 0x1d0   : > { %p2006_p7 = pneg %p2005_p8 }
 0x1d2   : > { %p2011_p0 = pnand %p2010_p11, %p2006_p7 }
 0x23e   : > { %v1472_v49 = vpop.xlane.xlu1 %1471 }
 0x23f   : > { %1473 = vst [vmem:[%s373_s28] sm:$0x1] %v1472_v49 }
 0x240   : > { %2014 = shalt.err (!%p2011_p0)
}
 0x241   : > { %1789 = dma.vmem_to_hbm [thread:$0]  (%p2176_p13), %s1524_s11, 16, %s1526_s22, %s2697_s24  }
 0x242 PF: > { %s1537_s26 = sand.u32 1, %s2049_s29   ;;  %p2803_p2 = scmp.ge.s32.totalorder %s2061_s10, 2 }
 0x243   : > { %s1538_s12 = scalar_lea.sflag [#allocation5], %s1537_s26 }
 0x244   : > { %p1802_p6 = pnand %p2803_p2, %p2183_p4 }
 0x246   : > { %p1803_p1 = pneg %p1802_p6 }
 0x248   : > { %2040 = dma.done.wait (%p1803_p1), %s1538_s12, 32  }
 0x249   : > { %2042 = vsyncadd (%p1803_p1), %s1538_s12, 4294967264  ;;  %s2804_s16 = sadd.s32 4294967294, %s2061_s10  }
 0x24a   : > { %s1547_s15 = sand.u32 1, %s2804_s16  }
 0x24b   : > { %s1548_s14 = scalar_lea.sflag [#allocation10], %s1547_s15 }
 0x24c   : > { %2044 = dma.done.wait (%p1803_p1), %s1548_s14, 48  }
 0x24d   : > { %2046 = vsyncadd (%p1803_p1), %s1548_s14, 4294967248  ;;  %p27_p13 = scmp.ge.s32.totalorder %s2156_s20, 4   ;;  %s2805_s29 = smov %s2053_s30 }
 0x24e   : > { %s2806_s30 = smov %s2057_s9  ;;  %s2807_s9 = smov %s2168_s23 }
 0x24f   : > { %s2808_s10 = smov %s2156_s20  ;;  %29 = sbr.rel (!%p27_p13) target bundleno = 12 (0xc), region = 129 }
 0x254   :  { %1563 = vsyncpa [#allocation4], 1 }
 0x255   :  { %1565 = vsyncpa [#allocation4 + $0x1], 1 }
 0x256   :  { %1566 = vsyncpa [#allocation7], 1 }
 0x257   :  { %1568 = vsyncpa [#allocation7 + $0x1], 1 }
 0x258   :  { %1569 = vsyncpa [#allocation5], 1 }
 0x259   :  { %1571 = vsyncpa [#allocation5 + $0x1], 1 }
 0x25a   :  { %1572 = vsyncpa [#allocation10], 1 }
 0x25b   :  { %1574 = vsyncpa [#allocation10 + $0x1], 1 }

</bundles_post_ra>
